<compile_context>
chip_gen: v7x
topology: tpu7x:2x2x1
jax: 0.10.0
libtpu: 0.0.40
codegen_flags: <defaults>
</compile_context>

<pallas_src>
import math

import jax
import jax.numpy as jnp
from jax.experimental import pallas as pl
from jax.experimental.pallas import tpu as pltpu  # noqa: F401  (kept for TPU-specific params if needed)

Attention_output_dim = 64
GCN_hidden_dim = 256
GCN_input_dim = 1024
GCN_output_dim = 63
Num_classes = 1
LN_EPS = 1e-5


# ----------------------------------------------------------------------------
# Fully fused kernel: one invocation, whole batch.
# ----------------------------------------------------------------------------
def fused_forward_kernel(x_ref, adj_ref, bias_ref, cen_ref,
                         w1_ref, w2_ref, qkv_ref, vec_ref, o_ref):
    B, N, _ = adj_ref.shape
    D = Attention_output_dim

    # ---- packed small parameters (2 DMAs total; static slices are free) ----
    b1 = vec_ref[0:1, :]                          # (1, 256)
    b2 = vec_ref[1:2, 0:D]                        # (1, 64)  (63 zero-padded)
    gamma = vec_ref[2:3, 0:D]                     # (1, 64)  LN gamma
    beta = vec_ref[3:4, 0:D]                      # (1, 64)  LN beta
    fc_w = vec_ref[4:5, 0:D]                      # (1, 64)  Linear(64->1) weight
    fc_b = vec_ref[5:6, 0:1]                      # (1, 1)   Linear bias
    wqkv = qkv_ref[0:D, :]                        # (64, 192) = [Wq/sqrt(D) | Wk | Wv]
    bqkv = qkv_ref[D:D + 1, :]                    # (1, 192)  = [bq/sqrt(D) | bk | bv]

    # ---- GCN layer 1: one big matmul over the whole batch (M = B*N rows) ----
    # x cast to bf16 in-kernel (matches bf16 W1); accumulation stays f32.
    x_bf16 = x_ref[...].astype(jnp.bfloat16)      # (B*N, 1024)
    xw_all = jnp.dot(x_bf16, w1_ref[...],
                     preferred_element_type=jnp.float32) + b1       # (B*N, 256)

    for b in range(B):                            # statically unrolled (B = 2)
        adj = adj_ref[b]                          # (N, N) f32
        xw = xw_all[b * N:(b + 1) * N, :]         # (N, 256)
        h1 = jnp.maximum(
            jnp.dot(adj, xw, preferred_element_type=jnp.float32), 0.0)

        # ---- GCN layer 2 (output lanes zero-padded 63 -> 64) ----
        hw = jnp.dot(h1, w2_ref[...], preferred_element_type=jnp.float32) + b2
        h2 = jnp.dot(adj, hw, preferred_element_type=jnp.float32)   # (N, 64)

        # key padding mask from post-GCN feature 0 (ref: x[:, :, 0].eq(0))
        feat0_row = jnp.transpose(h2[:, 0:1])     # (1, N)

        # fused concat: centrality written into lane 63 (the padded column)
        cen = cen_ref[b * N:(b + 1) * N, :]       # (N, 1)
        lane = jax.lax.broadcasted_iota(jnp.int32, h2.shape, 1)
        x_cat = jnp.where(lane == (D - 1), cen, h2)                 # (N, 64)

        # ---- single fused q|k|v projection (one MXU push) ----
        # NOTE: 1/sqrt(D) already folded into the Wq / bq columns at init.
        qkv = jnp.dot(x_cat, wqkv, preferred_element_type=jnp.float32) + bqkv
        q = qkv[:, 0:D]
        k = qkv[:, D:2 * D]
        v = qkv[:, 2 * D:3 * D]

        scores = jax.lax.dot_general(q, k, (((1,), (1,)), ((), ())),
                                     preferred_element_type=jnp.float32)
        scores = scores + bias_ref[b]
        scores = jnp.where(feat0_row == 0.0, -1e9, scores)          # mask keys

        m = jnp.max(scores, axis=-1, keepdims=True)
        e = jnp.exp(scores - m)
        attn = e / jnp.sum(e, axis=-1, keepdims=True)               # exact softmax
        ao = jnp.dot(attn, v, preferred_element_type=jnp.float32)   # (N, 64)

        # ---- head: mean over nodes, LayerNorm(64), Linear(64->1), sigmoid ----
        xm = jnp.mean(ao, axis=0, keepdims=True)                    # (1, 64)
        mu = jnp.mean(xm, axis=-1, keepdims=True)
        var = jnp.mean((xm - mu) ** 2, axis=-1, keepdims=True)
        xn = (xm - mu) * jax.lax.rsqrt(var + LN_EPS)
        y = xn * gamma + beta
        logit = jnp.sum(y * fc_w, axis=-1, keepdims=True) + fc_b    # (1, 1)
        o_ref[b:b + 1, :] = jax.nn.sigmoid(logit)


def fused_forward(x2, adj, attn_bias, cen2, p):
    BN, Fin = x2.shape
    B, N, _ = adj.shape
    D = Attention_output_dim
    H = GCN_hidden_dim

    flops = (2 * BN * Fin * H
             + B * (2 * N * N * H            # adj @ (x W1)
                    + 2 * N * H * D          # h1 @ W2
                    + 2 * N * N * D          # adj @ (h1 W2)
                    + 2 * N * D * 3 * D      # fused qkv projection
                    + 2 * N * N * D          # q @ k^T
                    + 2 * N * N * D))        # attn @ v
    transcendentals = B * (N * N + 1)
    bytes_accessed = (x2.size * 4 + adj.size * 4 + attn_bias.size * 4
                      + cen2.size * 4
                      + p["gcn_w1"].size * 2 + p["gcn_w2"].size * 4
                      + p["qkv_pack"].size * 4 + p["vec_pack"].size * 4
                      + B * Num_classes * 4)

    return pl.pallas_call(
        fused_forward_kernel,
        out_shape=jax.ShapeDtypeStruct((B, Num_classes), jnp.float32),
        in_specs=[
            pl.BlockSpec((BN, Fin), lambda: (0, 0)),        # x        (f32, cast in-kernel)
            pl.BlockSpec((B, N, N), lambda: (0, 0, 0)),     # adj
            pl.BlockSpec((B, N, N), lambda: (0, 0, 0)),     # attn_bias
            pl.BlockSpec((BN, 1), lambda: (0, 0)),          # centrality
            pl.BlockSpec((Fin, H), lambda: (0, 0)),         # W1 (bf16)
            pl.BlockSpec((H, D), lambda: (0, 0)),           # W2 (padded 63->64)
            pl.BlockSpec((D + 8, 3 * D), lambda: (0, 0)),   # packed [Wq|Wk|Wv ; bq|bk|bv]
            pl.BlockSpec((8, H), lambda: (0, 0)),           # packed small vectors
        ],
        out_specs=pl.BlockSpec((B, Num_classes), lambda: (0, 0)),
        cost_estimate=pl.CostEstimate(flops=flops,
                                      transcendentals=transcendentals,
                                      bytes_accessed=bytes_accessed),
    )(x2, adj, attn_bias, cen2,
      p["gcn_w1"], p["gcn_w2"], p["qkv_pack"], p["vec_pack"])


# ----------------------------------------------------------------------------
# Parameter construction (deterministic, in-script, packed once at init)
# ----------------------------------------------------------------------------
def init_params(key):
    ks = jax.random.split(key, 12)

    def uni(k, shape, fan_in):
        bound = 1.0 / math.sqrt(fan_in)
        return jax.random.uniform(k, shape, jnp.float32, -bound, bound)

    D = Attention_output_dim
    H = GCN_hidden_dim
    scale = 1.0 / math.sqrt(D)

    w1 = uni(ks[0], (GCN_input_dim, H), GCN_input_dim).astype(jnp.bfloat16)
    b1 = uni(ks[1], (1, H), GCN_input_dim)
    w2 = uni(ks[2], (H, GCN_output_dim), H)
    b2 = uni(ks[3], (1, GCN_output_dim), H)
    wq = uni(ks[4], (D, D), D)
    wk = uni(ks[5], (D, D), D)
    wv = uni(ks[6], (D, D), D)
    bq = uni(ks[7], (1, D), D)
    bk = uni(ks[8], (1, D), D)
    bv = uni(ks[9], (1, D), D)
    ln_gamma = jnp.ones((1, D), jnp.float32)
    ln_beta = jnp.zeros((1, D), jnp.float32)
    fc_w = uni(ks[10], (1, D), D)       # nn.Linear(64, 1) weight row
    fc_b = uni(ks[11], (1, Num_classes), D)

    # GCN2 output zero-padded 63 -> 64; lane 63 is overwritten with centrality.
    w2_pad = jnp.pad(w2, ((0, 0), (0, D - GCN_output_dim)))
    b2_pad = jnp.pad(b2, ((0, 0), (0, D - GCN_output_dim)))

    # (72, 192): rows 0..63 = [Wq/sqrt(D) | Wk | Wv], row 64 = [bq/sqrt(D) | bk | bv]
    wqkv = jnp.concatenate([wq * scale, wk, wv], axis=1)
    bqkv = jnp.concatenate([bq * scale, bk, bv], axis=1)
    qkv_pack = jnp.concatenate(
        [wqkv, bqkv, jnp.zeros((7, 3 * D), jnp.float32)], axis=0)

    # (8, 256): b1 / b2 / ln_gamma / ln_beta / fc_w / fc_b padded to 256 lanes
    def pad256(v):
        return jnp.pad(v, ((0, 0), (0, H - v.shape[1])))

    vec_pack = jnp.concatenate([
        b1,                    # row 0
        pad256(b2_pad),        # row 1
        pad256(ln_gamma),      # row 2
        pad256(ln_beta),       # row 3
        pad256(fc_w),          # row 4
        pad256(fc_b),          # row 5
        jnp.zeros((2, H), jnp.float32),   # rows 6-7
    ], axis=0)

    return {"gcn_w1": w1, "gcn_w2": w2_pad,
            "qkv_pack": qkv_pack, "vec_pack": vec_pack}


# ----------------------------------------------------------------------------
# Full forward pass (mirrors Model.forward), single fused pallas_call.
# Wrapper-side ops are contiguous reshapes only (bitcasts, no extra kernels).
# ----------------------------------------------------------------------------
@jax.jit
def model_forward(params, x, adj, attn_bias, centrality):
    B, N, Fin = x.shape
    x2 = x.reshape(B * N, Fin)                 # contiguous -> bitcast
    cen2 = centrality.reshape(B * N, 1)        # contiguous -> bitcast
    return fused_forward(x2, adj, attn_bias, cen2, params)


if __name__ == "__main__":
    B, N = 2, 8  # small batch, 8 graph nodes (sublane-aligned)

    key = jax.random.PRNGKey(0)
    k_par, k_x, k_adj, k_bias, k_cen = jax.random.split(key, 5)

    params = init_params(k_par)

    x = jax.random.normal(k_x, (B, N, GCN_input_dim), jnp.float32)
    adj_raw = jax.random.uniform(k_adj, (B, N, N), jnp.float32)
    adj = adj_raw / jnp.sum(adj_raw, axis=-1, keepdims=True)  # row-normalized
    attn_bias = 0.1 * jax.random.normal(k_bias, (B, N, N), jnp.float32)
    centrality = jax.random.normal(k_cen, (B, N), jnp.float32)

    out = model_forward(params, x, adj, attn_bias, centrality)
    # torch `output.squeeze(0)` only squeezes when the leading dim is 1
    if out.shape[0] == 1:
        out = out[0]
    jax.block_until_ready(out)

    assert out.shape == (B, Num_classes)
    assert bool(jnp.all(jnp.isfinite(out)))
    print("KERNEL_OK")
</pallas_src>

<mosaic_0001>
module attributes {stable_mosaic.version = 11 : i64} {
  func.func @fused_forward_kernel(%arg0: memref<16x1024xf32, #tpu.memory_space<vmem>>, %arg1: memref<2x8x8xf32, #tpu.memory_space<vmem>>, %arg2: memref<2x8x8xf32, #tpu.memory_space<vmem>>, %arg3: memref<16x1xf32, #tpu.memory_space<vmem>>, %arg4: memref<1024x256xbf16, #tpu.memory_space<vmem>>, %arg5: memref<256x64xf32, #tpu.memory_space<vmem>>, %arg6: memref<72x192xf32, #tpu.memory_space<vmem>>, %arg7: memref<8x256xf32, #tpu.memory_space<vmem>>, %arg8: memref<2x1xf32, #tpu.memory_space<vmem>>) attributes {dimension_semantics = [], scalar_prefetch = 0 : i64, scratch_operands = 0 : i64, tpu.core_type = #tpu.core_type<tc>} {
    %c0 = arith.constant 0 : index
    %c0_0 = arith.constant 0 : index
    %0 = vector.load %arg7[%c0, %c0_0] : memref<8x256xf32, #tpu.memory_space<vmem>>, vector<1x256xf32>
    %c1 = arith.constant 1 : index
    %c0_1 = arith.constant 0 : index
    %1 = vector.load %arg7[%c1, %c0_1] : memref<8x256xf32, #tpu.memory_space<vmem>>, vector<1x64xf32>
    %c2 = arith.constant 2 : index
    %c0_2 = arith.constant 0 : index
    %2 = vector.load %arg7[%c2, %c0_2] : memref<8x256xf32, #tpu.memory_space<vmem>>, vector<1x64xf32>
    %c3 = arith.constant 3 : index
    %c0_3 = arith.constant 0 : index
    %3 = vector.load %arg7[%c3, %c0_3] : memref<8x256xf32, #tpu.memory_space<vmem>>, vector<1x64xf32>
    %c4 = arith.constant 4 : index
    %c0_4 = arith.constant 0 : index
    %4 = vector.load %arg7[%c4, %c0_4] : memref<8x256xf32, #tpu.memory_space<vmem>>, vector<1x64xf32>
    %c5 = arith.constant 5 : index
    %c0_5 = arith.constant 0 : index
    %5 = vector.load %arg7[%c5, %c0_5] : memref<8x256xf32, #tpu.memory_space<vmem>>, vector<1x1xf32>
    %c0_6 = arith.constant 0 : index
    %c0_7 = arith.constant 0 : index
    %6 = vector.load %arg6[%c0_6, %c0_7] : memref<72x192xf32, #tpu.memory_space<vmem>>, vector<64x192xf32>
    %c64 = arith.constant 64 : index
    %c0_8 = arith.constant 0 : index
    %7 = vector.load %arg6[%c64, %c0_8] : memref<72x192xf32, #tpu.memory_space<vmem>>, vector<1x192xf32>
    %c0_9 = arith.constant 0 : index
    %c0_10 = arith.constant 0 : index
    %8 = vector.load %arg0[%c0_9, %c0_10] : memref<16x1024xf32, #tpu.memory_space<vmem>>, vector<16x1024xf32>
    %9 = arith.truncf %8 : vector<16x1024xf32> to vector<16x1024xbf16>
    %c0_11 = arith.constant 0 : index
    %c0_12 = arith.constant 0 : index
    %10 = vector.load %arg4[%c0_11, %c0_12] : memref<1024x256xbf16, #tpu.memory_space<vmem>>, vector<1024x256xbf16>
    %cst = arith.constant dense<0.000000e+00> : vector<16x256xf32>
    %11 = tpu.matmul %9, %10, %cst {dimension_numbers = #tpu.dot_dimension_numbers<[1], [0], [0], [1], [0, 0, 1, 1], [], []>} : vector<16x1024xbf16>, vector<1024x256xbf16>, vector<16x256xf32> -> vector<16x256xf32>
    %12 = vector.broadcast %0 : vector<1x256xf32> to vector<16x256xf32>
    %13 = arith.addf %11, %12 : vector<16x256xf32>
    %c0_13 = arith.constant 0 : index
    %c0_14 = arith.constant 0 : index
    %c0_15 = arith.constant 0 : index
    %14 = vector.load %arg1[%c0_13, %c0_14, %c0_15] : memref<2x8x8xf32, #tpu.memory_space<vmem>>, vector<1x8x8xf32>
    %15 = vector.shape_cast %14 : vector<1x8x8xf32> to vector<8x8xf32>
    %16 = vector.extract_strided_slice %13 {offsets = [0, 0], sizes = [8, 256], strides = [1, 1]} : vector<16x256xf32> to vector<8x256xf32>
    %cst_16 = arith.constant dense<0.000000e+00> : vector<8x256xf32>
    %17 = tpu.matmul %15, %16, %cst_16 {dimension_numbers = #tpu.dot_dimension_numbers<[1], [0], [0], [1], [0, 0, 1, 1], [], []>} : vector<8x8xf32>, vector<8x256xf32>, vector<8x256xf32> -> vector<8x256xf32>
    %cst_17 = arith.constant 0.000000e+00 : f32
    %18 = vector.broadcast %cst_17 : f32 to vector<8x256xf32>
    %19 = arith.maximumf %17, %18 : vector<8x256xf32>
    %c0_18 = arith.constant 0 : index
    %c0_19 = arith.constant 0 : index
    %20 = vector.load %arg5[%c0_18, %c0_19] : memref<256x64xf32, #tpu.memory_space<vmem>>, vector<256x64xf32>
    %cst_20 = arith.constant dense<0.000000e+00> : vector<8x64xf32>
    %21 = tpu.matmul %19, %20, %cst_20 {dimension_numbers = #tpu.dot_dimension_numbers<[1], [0], [0], [1], [0, 0, 1, 1], [], []>} : vector<8x256xf32>, vector<256x64xf32>, vector<8x64xf32> -> vector<8x64xf32>
    %22 = vector.broadcast %1 : vector<1x64xf32> to vector<8x64xf32>
    %23 = arith.addf %21, %22 : vector<8x64xf32>
    %cst_21 = arith.constant dense<0.000000e+00> : vector<8x64xf32>
    %24 = tpu.matmul %15, %23, %cst_21 {dimension_numbers = #tpu.dot_dimension_numbers<[1], [0], [0], [1], [0, 0, 1, 1], [], []>} : vector<8x8xf32>, vector<8x64xf32>, vector<8x64xf32> -> vector<8x64xf32>
    %25 = vector.extract_strided_slice %24 {offsets = [0, 0], sizes = [8, 1], strides = [1, 1]} : vector<8x64xf32> to vector<8x1xf32>
    %26 = tpu.transpose %25, [1, 0] : vector<8x1xf32> -> vector<1x8xf32>
    %c0_22 = arith.constant 0 : index
    %c0_23 = arith.constant 0 : index
    %27 = vector.load %arg3[%c0_22, %c0_23] : memref<16x1xf32, #tpu.memory_space<vmem>>, vector<8x1xf32>
    %28 = tpu.iota {dimensions = array<i32: 1>} : vector<8x64xi32>
    %c63_i32 = arith.constant 63 : i32
    %29 = vector.broadcast %c63_i32 : i32 to vector<8x64xi32>
    %30 = arith.cmpi eq, %28, %29 : vector<8x64xi32>
    %31 = vector.shape_cast %27 : vector<8x1xf32> to vector<8x1xf32>
    %32 = vector.broadcast %31 : vector<8x1xf32> to vector<8x64xf32>
    %33 = arith.select %30, %32, %24 : vector<8x64xi1>, vector<8x64xf32>
    %cst_24 = arith.constant dense<0.000000e+00> : vector<8x192xf32>
    %34 = tpu.matmul %33, %6, %cst_24 {dimension_numbers = #tpu.dot_dimension_numbers<[1], [0], [0], [1], [0, 0, 1, 1], [], []>} : vector<8x64xf32>, vector<64x192xf32>, vector<8x192xf32> -> vector<8x192xf32>
    %35 = vector.broadcast %7 : vector<1x192xf32> to vector<8x192xf32>
    %36 = arith.addf %34, %35 : vector<8x192xf32>
    %37 = vector.extract_strided_slice %36 {offsets = [0, 0], sizes = [8, 64], strides = [1, 1]} : vector<8x192xf32> to vector<8x64xf32>
    %38 = vector.extract_strided_slice %36 {offsets = [0, 64], sizes = [8, 64], strides = [1, 1]} : vector<8x192xf32> to vector<8x64xf32>
    %39 = vector.extract_strided_slice %36 {offsets = [0, 128], sizes = [8, 64], strides = [1, 1]} : vector<8x192xf32> to vector<8x64xf32>
    %cst_25 = arith.constant dense<0.000000e+00> : vector<8x8xf32>
    %40 = tpu.matmul %37, %38, %cst_25 {dimension_numbers = #tpu.dot_dimension_numbers<[1], [1], [0], [0], [0, 0, 1, 0], [], []>} : vector<8x64xf32>, vector<8x64xf32>, vector<8x8xf32> -> vector<8x8xf32>
    %c0_26 = arith.constant 0 : index
    %c0_27 = arith.constant 0 : index
    %c0_28 = arith.constant 0 : index
    %41 = vector.load %arg2[%c0_26, %c0_27, %c0_28] : memref<2x8x8xf32, #tpu.memory_space<vmem>>, vector<1x8x8xf32>
    %42 = vector.shape_cast %41 : vector<1x8x8xf32> to vector<8x8xf32>
    %43 = arith.addf %40, %42 : vector<8x8xf32>
    %cst_29 = arith.constant 0.000000e+00 : f32
    %44 = vector.broadcast %cst_29 : f32 to vector<1x8xf32>
    %45 = arith.cmpf oeq, %26, %44 : vector<1x8xf32>
    %cst_30 = arith.constant -1.000000e+09 : f32
    %46 = vector.shape_cast %45 : vector<1x8xi1> to vector<1x8xi1>
    %47 = vector.broadcast %46 : vector<1x8xi1> to vector<8x8xi1>
    %48 = vector.broadcast %cst_30 : f32 to vector<8x8xf32>
    %49 = arith.select %47, %48, %43 : vector<8x8xi1>, vector<8x8xf32>
    %cst_31 = arith.constant dense<0xFF800000> : vector<8xf32>
    %50 = vector.multi_reduction <maximumf>, %49, %cst_31 [1] : vector<8x8xf32> to vector<8xf32>
    %51 = vector.shape_cast %50 : vector<8xf32> to vector<8x1xf32>
    %52 = vector.broadcast %51 : vector<8x1xf32> to vector<8x8xf32>
    %53 = arith.subf %49, %52 : vector<8x8xf32>
    %54 = math.exp %53 : vector<8x8xf32>
    %cst_32 = arith.constant dense<0.000000e+00> : vector<8xf32>
    %55 = vector.multi_reduction <add>, %54, %cst_32 [1] : vector<8x8xf32> to vector<8xf32>
    %56 = vector.shape_cast %55 : vector<8xf32> to vector<8x1xf32>
    %57 = vector.broadcast %56 : vector<8x1xf32> to vector<8x8xf32>
    %58 = arith.divf %54, %57 : vector<8x8xf32>
    %cst_33 = arith.constant dense<0.000000e+00> : vector<8x64xf32>
    %59 = tpu.matmul %58, %39, %cst_33 {dimension_numbers = #tpu.dot_dimension_numbers<[1], [0], [0], [1], [0, 0, 1, 1], [], []>} : vector<8x8xf32>, vector<8x64xf32>, vector<8x64xf32> -> vector<8x64xf32>
    %cst_34 = arith.constant dense<0.000000e+00> : vector<64xf32>
    %60 = vector.multi_reduction <add>, %59, %cst_34 [0] : vector<8x64xf32> to vector<64xf32>
    %61 = vector.shape_cast %60 : vector<64xf32> to vector<1x64xf32>
    %cst_35 = arith.constant 8.000000e+00 : f32
    %62 = vector.broadcast %cst_35 : f32 to vector<1x64xf32>
    %63 = arith.divf %61, %62 : vector<1x64xf32>
    %cst_36 = arith.constant dense<0.000000e+00> : vector<1xf32>
    %64 = vector.multi_reduction <add>, %63, %cst_36 [1] : vector<1x64xf32> to vector<1xf32>
    %65 = vector.shape_cast %64 : vector<1xf32> to vector<1x1xf32>
    %cst_37 = arith.constant 6.400000e+01 : f32
    %66 = vector.broadcast %cst_37 : f32 to vector<1x1xf32>
    %67 = arith.divf %65, %66 : vector<1x1xf32>
    %68 = vector.broadcast %67 : vector<1x1xf32> to vector<1x64xf32>
    %69 = arith.subf %63, %68 : vector<1x64xf32>
    %70 = arith.mulf %69, %69 : vector<1x64xf32>
    %cst_38 = arith.constant dense<0.000000e+00> : vector<1xf32>
    %71 = vector.multi_reduction <add>, %70, %cst_38 [1] : vector<1x64xf32> to vector<1xf32>
    %72 = vector.shape_cast %71 : vector<1xf32> to vector<1x1xf32>
    %cst_39 = arith.constant 6.400000e+01 : f32
    %73 = vector.broadcast %cst_39 : f32 to vector<1x1xf32>
    %74 = arith.divf %72, %73 : vector<1x1xf32>
    %75 = vector.broadcast %67 : vector<1x1xf32> to vector<1x64xf32>
    %76 = arith.subf %63, %75 : vector<1x64xf32>
    %cst_40 = arith.constant 9.99999974E-6 : f32
    %77 = vector.broadcast %cst_40 : f32 to vector<1x1xf32>
    %78 = arith.addf %74, %77 : vector<1x1xf32>
    %79 = math.rsqrt %78 : vector<1x1xf32>
    %80 = vector.broadcast %79 : vector<1x1xf32> to vector<1x64xf32>
    %81 = arith.mulf %76, %80 : vector<1x64xf32>
    %82 = arith.mulf %81, %2 : vector<1x64xf32>
    %83 = arith.addf %82, %3 : vector<1x64xf32>
    %84 = arith.mulf %83, %4 : vector<1x64xf32>
    %cst_41 = arith.constant dense<0.000000e+00> : vector<1xf32>
    %85 = vector.multi_reduction <add>, %84, %cst_41 [1] : vector<1x64xf32> to vector<1xf32>
    %86 = vector.shape_cast %85 : vector<1xf32> to vector<1x1xf32>
    %87 = arith.addf %86, %5 : vector<1x1xf32>
    %88 = arith.negf %87 : vector<1x1xf32>
    %89 = math.exp %88 : vector<1x1xf32>
    %cst_42 = arith.constant 1.000000e+00 : f32
    %90 = vector.broadcast %cst_42 : f32 to vector<1x1xf32>
    %91 = arith.addf %90, %89 : vector<1x1xf32>
    %92 = arith.divf %90, %91 : vector<1x1xf32>
    %c0_43 = arith.constant 0 : index
    %c0_44 = arith.constant 0 : index
    %93 = vector.load %arg8[%c0_43, %c0_44] : memref<2x1xf32, #tpu.memory_space<vmem>>, vector<1x1xf32>
    tpu.vector_store %arg8[%c0_43, %c0_44], %92 {strides = array<i32>} : memref<2x1xf32, #tpu.memory_space<vmem>>, vector<1x1xf32>,
    %c1_45 = arith.constant 1 : index
    %c0_46 = arith.constant 0 : index
    %c0_47 = arith.constant 0 : index
    %94 = vector.load %arg1[%c1_45, %c0_46, %c0_47] : memref<2x8x8xf32, #tpu.memory_space<vmem>>, vector<1x8x8xf32>
    %95 = vector.shape_cast %94 : vector<1x8x8xf32> to vector<8x8xf32>
    %96 = vector.extract_strided_slice %13 {offsets = [8, 0], sizes = [8, 256], strides = [1, 1]} : vector<16x256xf32> to vector<8x256xf32>
    %cst_48 = arith.constant dense<0.000000e+00> : vector<8x256xf32>
    %97 = tpu.matmul %95, %96, %cst_48 {dimension_numbers = #tpu.dot_dimension_numbers<[1], [0], [0], [1], [0, 0, 1, 1], [], []>} : vector<8x8xf32>, vector<8x256xf32>, vector<8x256xf32> -> vector<8x256xf32>
    %cst_49 = arith.constant 0.000000e+00 : f32
    %98 = vector.broadcast %cst_49 : f32 to vector<8x256xf32>
    %99 = arith.maximumf %97, %98 : vector<8x256xf32>
    %c0_50 = arith.constant 0 : index
    %c0_51 = arith.constant 0 : index
    %100 = vector.load %arg5[%c0_50, %c0_51] : memref<256x64xf32, #tpu.memory_space<vmem>>, vector<256x64xf32>
    %cst_52 = arith.constant dense<0.000000e+00> : vector<8x64xf32>
    %101 = tpu.matmul %99, %100, %cst_52 {dimension_numbers = #tpu.dot_dimension_numbers<[1], [0], [0], [1], [0, 0, 1, 1], [], []>} : vector<8x256xf32>, vector<256x64xf32>, vector<8x64xf32> -> vector<8x64xf32>
    %102 = vector.broadcast %1 : vector<1x64xf32> to vector<8x64xf32>
    %103 = arith.addf %101, %102 : vector<8x64xf32>
    %cst_53 = arith.constant dense<0.000000e+00> : vector<8x64xf32>
    %104 = tpu.matmul %95, %103, %cst_53 {dimension_numbers = #tpu.dot_dimension_numbers<[1], [0], [0], [1], [0, 0, 1, 1], [], []>} : vector<8x8xf32>, vector<8x64xf32>, vector<8x64xf32> -> vector<8x64xf32>
    %105 = vector.extract_strided_slice %104 {offsets = [0, 0], sizes = [8, 1], strides = [1, 1]} : vector<8x64xf32> to vector<8x1xf32>
    %106 = tpu.transpose %105, [1, 0] : vector<8x1xf32> -> vector<1x8xf32>
    %c8 = arith.constant 8 : index
    %c0_54 = arith.constant 0 : index
    %107 = vector.load %arg3[%c8, %c0_54] : memref<16x1xf32, #tpu.memory_space<vmem>>, vector<8x1xf32>
    %108 = tpu.iota {dimensions = array<i32: 1>} : vector<8x64xi32>
    %c63_i32_55 = arith.constant 63 : i32
    %109 = vector.broadcast %c63_i32_55 : i32 to vector<8x64xi32>
    %110 = arith.cmpi eq, %108, %109 : vector<8x64xi32>
    %111 = vector.shape_cast %107 : vector<8x1xf32> to vector<8x1xf32>
    %112 = vector.broadcast %111 : vector<8x1xf32> to vector<8x64xf32>
    %113 = arith.select %110, %112, %104 : vector<8x64xi1>, vector<8x64xf32>
    %cst_56 = arith.constant dense<0.000000e+00> : vector<8x192xf32>
    %114 = tpu.matmul %113, %6, %cst_56 {dimension_numbers = #tpu.dot_dimension_numbers<[1], [0], [0], [1], [0, 0, 1, 1], [], []>} : vector<8x64xf32>, vector<64x192xf32>, vector<8x192xf32> -> vector<8x192xf32>
    %115 = vector.broadcast %7 : vector<1x192xf32> to vector<8x192xf32>
    %116 = arith.addf %114, %115 : vector<8x192xf32>
    %117 = vector.extract_strided_slice %116 {offsets = [0, 0], sizes = [8, 64], strides = [1, 1]} : vector<8x192xf32> to vector<8x64xf32>
    %118 = vector.extract_strided_slice %116 {offsets = [0, 64], sizes = [8, 64], strides = [1, 1]} : vector<8x192xf32> to vector<8x64xf32>
    %119 = vector.extract_strided_slice %116 {offsets = [0, 128], sizes = [8, 64], strides = [1, 1]} : vector<8x192xf32> to vector<8x64xf32>
    %cst_57 = arith.constant dense<0.000000e+00> : vector<8x8xf32>
    %120 = tpu.matmul %117, %118, %cst_57 {dimension_numbers = #tpu.dot_dimension_numbers<[1], [1], [0], [0], [0, 0, 1, 0], [], []>} : vector<8x64xf32>, vector<8x64xf32>, vector<8x8xf32> -> vector<8x8xf32>
    %c1_58 = arith.constant 1 : index
    %c0_59 = arith.constant 0 : index
    %c0_60 = arith.constant 0 : index
    %121 = vector.load %arg2[%c1_58, %c0_59, %c0_60] : memref<2x8x8xf32, #tpu.memory_space<vmem>>, vector<1x8x8xf32>
    %122 = vector.shape_cast %121 : vector<1x8x8xf32> to vector<8x8xf32>
    %123 = arith.addf %120, %122 : vector<8x8xf32>
    %cst_61 = arith.constant 0.000000e+00 : f32
    %124 = vector.broadcast %cst_61 : f32 to vector<1x8xf32>
    %125 = arith.cmpf oeq, %106, %124 : vector<1x8xf32>
    %cst_62 = arith.constant -1.000000e+09 : f32
    %126 = vector.shape_cast %125 : vector<1x8xi1> to vector<1x8xi1>
    %127 = vector.broadcast %126 : vector<1x8xi1> to vector<8x8xi1>
    %128 = vector.broadcast %cst_62 : f32 to vector<8x8xf32>
    %129 = arith.select %127, %128, %123 : vector<8x8xi1>, vector<8x8xf32>
    %cst_63 = arith.constant dense<0xFF800000> : vector<8xf32>
    %130 = vector.multi_reduction <maximumf>, %129, %cst_63 [1] : vector<8x8xf32> to vector<8xf32>
    %131 = vector.shape_cast %130 : vector<8xf32> to vector<8x1xf32>
    %132 = vector.broadcast %131 : vector<8x1xf32> to vector<8x8xf32>
    %133 = arith.subf %129, %132 : vector<8x8xf32>
    %134 = math.exp %133 : vector<8x8xf32>
    %cst_64 = arith.constant dense<0.000000e+00> : vector<8xf32>
    %135 = vector.multi_reduction <add>, %134, %cst_64 [1] : vector<8x8xf32> to vector<8xf32>
    %136 = vector.shape_cast %135 : vector<8xf32> to vector<8x1xf32>
    %137 = vector.broadcast %136 : vector<8x1xf32> to vector<8x8xf32>
    %138 = arith.divf %134, %137 : vector<8x8xf32>
    %cst_65 = arith.constant dense<0.000000e+00> : vector<8x64xf32>
    %139 = tpu.matmul %138, %119, %cst_65 {dimension_numbers = #tpu.dot_dimension_numbers<[1], [0], [0], [1], [0, 0, 1, 1], [], []>} : vector<8x8xf32>, vector<8x64xf32>, vector<8x64xf32> -> vector<8x64xf32>
    %cst_66 = arith.constant dense<0.000000e+00> : vector<64xf32>
    %140 = vector.multi_reduction <add>, %139, %cst_66 [0] : vector<8x64xf32> to vector<64xf32>
    %141 = vector.shape_cast %140 : vector<64xf32> to vector<1x64xf32>
    %cst_67 = arith.constant 8.000000e+00 : f32
    %142 = vector.broadcast %cst_67 : f32 to vector<1x64xf32>
    %143 = arith.divf %141, %142 : vector<1x64xf32>
    %cst_68 = arith.constant dense<0.000000e+00> : vector<1xf32>
    %144 = vector.multi_reduction <add>, %143, %cst_68 [1] : vector<1x64xf32> to vector<1xf32>
    %145 = vector.shape_cast %144 : vector<1xf32> to vector<1x1xf32>
    %cst_69 = arith.constant 6.400000e+01 : f32
    %146 = vector.broadcast %cst_69 : f32 to vector<1x1xf32>
    %147 = arith.divf %145, %146 : vector<1x1xf32>
    %148 = vector.broadcast %147 : vector<1x1xf32> to vector<1x64xf32>
    %149 = arith.subf %143, %148 : vector<1x64xf32>
    %150 = arith.mulf %149, %149 : vector<1x64xf32>
    %cst_70 = arith.constant dense<0.000000e+00> : vector<1xf32>
    %151 = vector.multi_reduction <add>, %150, %cst_70 [1] : vector<1x64xf32> to vector<1xf32>
    %152 = vector.shape_cast %151 : vector<1xf32> to vector<1x1xf32>
    %cst_71 = arith.constant 6.400000e+01 : f32
    %153 = vector.broadcast %cst_71 : f32 to vector<1x1xf32>
    %154 = arith.divf %152, %153 : vector<1x1xf32>
    %155 = vector.broadcast %147 : vector<1x1xf32> to vector<1x64xf32>
    %156 = arith.subf %143, %155 : vector<1x64xf32>
    %cst_72 = arith.constant 9.99999974E-6 : f32
    %157 = vector.broadcast %cst_72 : f32 to vector<1x1xf32>
    %158 = arith.addf %154, %157 : vector<1x1xf32>
    %159 = math.rsqrt %158 : vector<1x1xf32>
    %160 = vector.broadcast %159 : vector<1x1xf32> to vector<1x64xf32>
    %161 = arith.mulf %156, %160 : vector<1x64xf32>
    %162 = arith.mulf %161, %2 : vector<1x64xf32>
    %163 = arith.addf %162, %3 : vector<1x64xf32>
    %164 = arith.mulf %163, %4 : vector<1x64xf32>
    %cst_73 = arith.constant dense<0.000000e+00> : vector<1xf32>
    %165 = vector.multi_reduction <add>, %164, %cst_73 [1] : vector<1x64xf32> to vector<1xf32>
    %166 = vector.shape_cast %165 : vector<1xf32> to vector<1x1xf32>
    %167 = arith.addf %166, %5 : vector<1x1xf32>
    %168 = arith.negf %167 : vector<1x1xf32>
    %169 = math.exp %168 : vector<1x1xf32>
    %cst_74 = arith.constant 1.000000e+00 : f32
    %170 = vector.broadcast %cst_74 : f32 to vector<1x1xf32>
    %171 = arith.addf %170, %169 : vector<1x1xf32>
    %172 = arith.divf %170, %171 : vector<1x1xf32>
    %c1_75 = arith.constant 1 : index
    %c0_76 = arith.constant 0 : index
    %173 = vector.load %arg8[%c1_75, %c0_76] : memref<2x1xf32, #tpu.memory_space<vmem>>, vector<1x1xf32>
    tpu.vector_store %arg8[%c1_75, %c0_76], %172 {strides = array<i32>} : memref<2x1xf32, #tpu.memory_space<vmem>>, vector<1x1xf32>,
    return
  }
}

</mosaic_0001>

<bundles_post_ra>
// kernel: model_forward.1
= control target key start
LH: loop header
LB: loop body
LE: loop exit
PB: predicated region body
PF: predicated region fallthrough
CT: control target
= control target key end

     0   :  { %13 = vsyncpa [#allocation3], 0  ;;  %s2815_s27 = smov [#allocation2]   ;;  %s3308_s0 = inlined_call_operand.vmem [shape: f32[16,1024], index: 0, kind: input, shape index: {}]   ;;  %s3309_s1 = inlined_call_operand.vmem [shape: f32[2,8,8], index: 1, kind: input, shape index: {}]   ;;  %s3310_s2 = inlined_call_operand.vmem [shape: f32[2,8,8], index: 2, kind: input, shape index: {}]   ;;  %s3311_s3 = inlined_call_operand.vmem [shape: f32[16,1], index: 3, kind: input, shape index: {}]   ;;  %s3312_s4 = inlined_call_operand.hbm [shape: bf16[1024,256], index: 4, kind: input, shape index: {}]   ;;  %s3313_s5 = inlined_call_operand.vmem [shape: f32[256,64], index: 5, kind: input, shape index: {}]   ;;  %s3314_s6 = inlined_call_operand.vmem [shape: f32[72,192], index: 6, kind: input, shape index: {}]   ;;  %s3315_s7 = inlined_call_operand.vmem [shape: f32[8,256], index: 7, kind: input, shape index: {}]   ;;  %s3316_s8 = inlined_call_operand.vmem [shape: f32[2,1], index: 8, kind: output, shape index: {}]  }
   0x1   :  { %s27_s28 = sshll.u32 %s2815_s27, 4  ;;  %s2791_s9 = scalar_lea.hbm %s3312_s4, 16384  ;;  %s28_s28 = int_to_ptr.vmem [resolvable:$true] %s27_s28 }
   0x2   :  { %p2792_p0 = scmp.ne.s32.totalorder %s3312_s4, %s2791_s9  ;;  %p2795_p1 = scmp.lt.u32.totalorder %s2791_s9, %s3312_s4 }
   0x4   :  { %p2797_p2 = pnand %p2795_p1, %p2792_p0 }
   0x6   :  { %2800 = shalt.err (!%p2797_p2)
}
   0x7   :  { %s2801_s14 = scalar_lea.vmem %s28_s28, 16384  ;;  %p2806_p4 = scmp.lt.s32.totalorder %s28_s28, %s28_s28 }
   0x8   :  { %p2802_p3 = scmp.ne.s32.totalorder %s28_s28, %s2801_s14  ;;  %p2807_p5 = scmp.lt.s32.totalorder %s2801_s14, %s2801_s14 }
   0xa   :  { %p2808_p6 = por %p2807_p5, %p2806_p4 }
   0xc   :  { %p2809_p7 = pnand %p2808_p6, %p2802_p3 }
   0xe   :  { %2812 = shalt.err (!%p2809_p7)
}
   0xf   :  { %s2816_s15 = smov 128   ;;  %s2817_s16 = smov 8  }
  0x10   :  { %33 = dma.hbm_to_vmem [thread:$0]  %s3312_s4, 16384, %s28_s28, [#allocation3], %s2816_s15, %s2816_s15, %s2817_s16  }
  0x11   :  { %2813 = dma.done.wait [#allocation3], 16384  }
  0x12   :  { %2814 = vsyncadd [#allocation3], 4294950912  ;;  %v2579_v0 = vld [vmem:[#allocation2 + $0x104] ss:$8 sps:$4 sm:$0xff]   ;;  %v2581_v1 = vld [vmem:[#allocation2 + $0x100] ss:$8 sps:$4 sm:$0xff]  }
  0x13   :  { %913 = vmatprep.subr.bf16.mxu0 %v2579_v0  ;;  %v2582_v2 = vld [vmem:[#allocation2 + $0x114] ss:$8 sps:$4 sm:$0xff]   ;;  %v2584_v3 = vld [vmem:[#allocation2 + $0x110] ss:$8 sps:$4 sm:$0xff]   ;;  %v2585_v4 = vld [vmem:[#allocation2 + $0x124] ss:$8 sps:$4 sm:$0xff]  }
  0x14   :  { %914 = vmatpush1.bf16.msra.mxu0 %v2581_v1  ;;  %v2587_v5 = vld [vmem:[#allocation2 + $0x120] ss:$8 sps:$4 sm:$0xff]   ;;  %v2588_v6 = vld [vmem:[#allocation2 + $0x134] ss:$8 sps:$4 sm:$0xff]   ;;  %v2590_v7 = vld [vmem:[#allocation2 + $0x130] ss:$8 sps:$4 sm:$0xff]  }
  0x15   :  { %915 = vmatprep.subr.bf16.mxu0 %v2582_v2  ;;  %v2591_v8 = vld [vmem:[#allocation2 + $0x144] ss:$8 sps:$4 sm:$0xff]   ;;  %v2593_v9 = vld [vmem:[#allocation2 + $0x140] ss:$8 sps:$4 sm:$0xff]   ;;  %v2594_v10 = vld [vmem:[#allocation2 + $0x154] ss:$8 sps:$4 sm:$0xff]  }
  0x16   :  { %v2596_v11 = vld [vmem:[#allocation2 + $0x150] ss:$8 sps:$4 sm:$0xff]   ;;  %v2597_v12 = vld [vmem:[#allocation2 + $0x164] ss:$8 sps:$4 sm:$0xff]   ;;  %v2599_v16 = vld [vmem:[#allocation2 + $0x160] ss:$8 sps:$4 sm:$0xff]  }
  0x17   :  { %v70_v13 = vld [vmem:[%s3308_s0 + $0x18] sm:$0xff]  ;;  %v2603_v19 = vld [vmem:[#allocation2 + $0x184] ss:$8 sps:$4 sm:$0xff]   ;;  %v2605_v20 = vld [vmem:[#allocation2 + $0x180] ss:$8 sps:$4 sm:$0xff]   ;;  %vm1043_vm0 = vcmask 64512  }
  0x18   :  { %916 = vmatpush1.bf16.msra.mxu0 %v2584_v3  ;;  %v78_v14 = vld [vmem:[%s3308_s0 + $0x58] sm:$0xff]  ;;  %v2609_v23 = vld [vmem:[#allocation2 + $0x1a4] ss:$8 sps:$4 sm:$0xff]   ;;  %v2611_v24 = vld [vmem:[#allocation2 + $0x1a0] ss:$8 sps:$4 sm:$0xff]   ;;  %vm2819_vm1 = vmmov 0  }
  0x19   :  { %917 = vmatprep.subr.bf16.mxu0 %v2585_v4  ;;  %v86_v15 = vpack.c.bf16 %v78_v14, %v70_v13  ;;  %v2600_v17 = vld [vmem:[#allocation2 + $0x174] ss:$8 sps:$4 sm:$0xff]   ;;  %v2602_v18 = vld [vmem:[#allocation2 + $0x170] ss:$8 sps:$4 sm:$0xff]   ;;  %v2672_v27 = vld [vmem:[#allocation2 + $0x4] ss:$8 sps:$4 sm:$0xff]  }
  0x1a   :  { %v2606_v21 = vld [vmem:[#allocation2 + $0x194] ss:$8 sps:$4 sm:$0xff]   ;;  %v2608_v22 = vld [vmem:[#allocation2 + $0x190] ss:$8 sps:$4 sm:$0xff]   ;;  %v2674_v28 = vld [vmem:[#allocation2] ss:$8 sps:$4 sm:$0xff]   ;;  %870 = vmatprep.subr.bf16.mxu1 %v2672_v27 }
  0x1b   :  { %945 = vmatprep.mubr.bf16.mxu0 %v86_v15  ;;  %v2612_v25 = vld [vmem:[#allocation2 + $0x1b4] ss:$8 sps:$4 sm:$0xff]   ;;  %v2614_v26 = vld [vmem:[#allocation2 + $0x1b0] ss:$8 sps:$4 sm:$0xff]   ;;  %v2615_v29 = vld [vmem:[#allocation2 + $0x1c4] ss:$8 sps:$4 sm:$0xff]   ;;  %871 = vmatpush1.bf16.msra.mxu1 %v2674_v28 }
  0x1c   :  { %918 = vmatpush1.bf16.msra.mxu0 %v2587_v5  ;;  %v2678_v30 = vld [vmem:[#allocation2 + $0x14] ss:$8 sps:$4 sm:$0xff]   ;;  %v2680_v31 = vld [vmem:[#allocation2 + $0x10] ss:$8 sps:$4 sm:$0xff]   ;;  %v2617_v32 = vld [vmem:[#allocation2 + $0x1c0] ss:$8 sps:$4 sm:$0xff]  }
  0x1d   :  { %919 = vmatprep.subr.bf16.mxu0 %v2588_v6  ;;  %v2618_v33 = vld [vmem:[#allocation2 + $0x1d4] ss:$8 sps:$4 sm:$0xff]   ;;  %872 = vmatprep.subr.bf16.mxu1 %v2678_v30  ;;  %v2684_v34 = vld [vmem:[#allocation2 + $0x24] ss:$8 sps:$4 sm:$0xff]   ;;  %v2686_v35 = vld [vmem:[#allocation2 + $0x20] ss:$8 sps:$4 sm:$0xff]  }
  0x1e   :  { %v2620_v36 = vld [vmem:[#allocation2 + $0x1d0] ss:$8 sps:$4 sm:$0xff]   ;;  %v2621_v37 = vld [vmem:[#allocation2 + $0x1e4] ss:$8 sps:$4 sm:$0xff]   ;;  %v2690_v38 = vld [vmem:[#allocation2 + $0x34] ss:$8 sps:$4 sm:$0xff]  }
  0x1f   :  { %873 = vmatpush1.bf16.msra.mxu1 %v2680_v31  ;;  %v2692_v39 = vld [vmem:[#allocation2 + $0x30] ss:$8 sps:$4 sm:$0xff]   ;;  %v2623_v40 = vld [vmem:[#allocation2 + $0x1e0] ss:$8 sps:$4 sm:$0xff]   ;;  %v2696_v41 = vld [vmem:[#allocation2 + $0x44] ss:$8 sps:$4 sm:$0xff]  }
  0x20   :  { %920 = vmatpush1.bf16.msra.mxu0 %v2590_v7  ;;  %874 = vmatprep.subr.bf16.mxu1 %v2684_v34  ;;  %v2624_v42 = vld [vmem:[#allocation2 + $0x1f4] ss:$8 sps:$4 sm:$0xff]   ;;  %v2626_v43 = vld [vmem:[#allocation2 + $0x1f0] ss:$8 sps:$4 sm:$0xff]   ;;  %v2629_v45 = vld [vmem:[#allocation2 + $0x204] ss:$8 sps:$4 sm:$0xff]  }
  0x21   :  { %921 = vmatprep.subr.bf16.mxu0 %v2591_v8  ;;  %v69_v44 = vld [vmem:[%s3308_s0 + $0x10] sm:$0xff]  ;;  %v2698_v47 = vld [vmem:[#allocation2 + $0x40] ss:$8 sps:$4 sm:$0xff]   ;;  %v2708_v56 = vld [vmem:[#allocation2 + $0x64] ss:$8 sps:$4 sm:$0xff]   ;;  %vm1345_vm3 = vcmask 523264  }
  0x22   :  { %v77_v46 = vld [vmem:[%s3308_s0 + $0x50] sm:$0xff]  ;;  %v72_v48 = vld [vmem:[%s3308_s0 + $0x28] sm:$0xff]  ;;  %v75_v34 = vld [vmem:[%s3308_s0 + $0x40] sm:$0xff]  ;;  %s2821_s12 = smov 64   ;;  %vm1626_vm8 = vcmask 0  }
  0x23   :  { %875 = vmatpush1.bf16.msra.mxu1 %v2686_v35  ;;  %v2702_v49 = vld [vmem:[#allocation2 + $0x54] ss:$8 sps:$4 sm:$0xff]   ;;  %v80_v50 = vld [vmem:[%s3308_s0 + $0x68] sm:$0xff]  ;;  %v85_v51 = vpack.c.bf16 %v77_v46, %v69_v44  ;;  %v2704_v52 = vld [vmem:[#allocation2 + $0x50] ss:$8 sps:$4 sm:$0xff]  }
  0x24   :  { %922 = vmatpush1.bf16.msra.mxu0 %v2593_v9  ;;  %876 = vmatprep.subr.bf16.mxu1 %v2690_v38  ;;  %v2627_v53 = vld [vmem:[#allocation2 + $0x200] ss:$8 sps:$4 sm:$0xff]   ;;  %v2632_v54 = vld [vmem:[#allocation2 + $0x214] ss:$8 sps:$4 sm:$0xff]   ;;  %v88_v55 = vpack.c.bf16 %v80_v50, %v72_v48  ;;  %v2630_v58 = vld [vmem:[#allocation2 + $0x210] ss:$8 sps:$4 sm:$0xff]  }
  0x25   :  { %923 = vmatprep.subr.bf16.mxu0 %v2594_v10  ;;  %v2710_v57 = vld [vmem:[#allocation2 + $0x60] ss:$8 sps:$4 sm:$0xff]   ;;  %v2714_v59 = vld [vmem:[#allocation2 + $0x74] ss:$8 sps:$4 sm:$0xff]   ;;  %v2635_v60 = vld [vmem:[#allocation2 + $0x224] ss:$8 sps:$4 sm:$0xff]  }
  0x26   :  { %v2716_v61 = vld [vmem:[#allocation2 + $0x70] ss:$8 sps:$4 sm:$0xff]   ;;  %v2633_v62 = vld [vmem:[#allocation2 + $0x220] ss:$8 sps:$4 sm:$0xff]   ;;  %v2720_v63 = vld [vmem:[#allocation2 + $0x84] ss:$8 sps:$4 sm:$0xff]  }
  0x27   :  { %877 = vmatpush1.bf16.msra.mxu1 %v2692_v39  ;;  %v2638_v0 = vld [vmem:[#allocation2 + $0x234] ss:$8 sps:$4 sm:$0xff]   ;;  %v2722_v1 = vld [vmem:[#allocation2 + $0x80] ss:$8 sps:$4 sm:$0xff]   ;;  %v2636_v2 = vld [vmem:[#allocation2 + $0x230] ss:$8 sps:$4 sm:$0xff]  }
  0x28   :  { %924 = vmatpush1.bf16.msra.mxu0 %v2596_v11  ;;  %878 = vmatprep.subr.bf16.mxu1 %v2696_v41  ;;  %v2726_v3 = vld [vmem:[#allocation2 + $0x94] ss:$8 sps:$4 sm:$0xff]   ;;  %v2641_v4 = vld [vmem:[#allocation2 + $0x244] ss:$8 sps:$4 sm:$0xff]   ;;  %v2728_v5 = vld [vmem:[#allocation2 + $0x90] ss:$8 sps:$4 sm:$0xff]  }
  0x29   :  { %925 = vmatprep.subr.bf16.mxu0 %v2597_v12  ;;  %v2639_v6 = vld [vmem:[#allocation2 + $0x240] ss:$8 sps:$4 sm:$0xff]   ;;  %v2732_v7 = vld [vmem:[#allocation2 + $0xa4] ss:$8 sps:$4 sm:$0xff]   ;;  %v2644_v8 = vld [vmem:[#allocation2 + $0x254] ss:$8 sps:$4 sm:$0xff]  }
  0x2a   :  { %v2734_v9 = vld [vmem:[#allocation2 + $0xa0] ss:$8 sps:$4 sm:$0xff]   ;;  %v2642_v10 = vld [vmem:[#allocation2 + $0x250] ss:$8 sps:$4 sm:$0xff]   ;;  %v2738_v11 = vld [vmem:[#allocation2 + $0xb4] ss:$8 sps:$4 sm:$0xff]  }
  0x2b   :  { %879 = vmatpush1.bf16.msra.mxu1 %v2698_v47  ;;  %v2647_v12 = vld [vmem:[#allocation2 + $0x264] ss:$8 sps:$4 sm:$0xff]   ;;  %v2740_v13 = vld [vmem:[#allocation2 + $0xb0] ss:$8 sps:$4 sm:$0xff]   ;;  %v2645_v15 = vld [vmem:[#allocation2 + $0x260] ss:$8 sps:$4 sm:$0xff]  }
  0x2c   :  { %926 = vmatpush1.bf16.msra.mxu0 %v2599_v16  ;;  %880 = vmatprep.subr.bf16.mxu1 %v2702_v49  ;;  %v68_v14 = vld [vmem:[%s3308_s0 + $0x8] sm:$0xff]  ;;  %v2656_v27 = vld [vmem:[#allocation2 + $0x294] ss:$8 sps:$4 sm:$0xff]   ;;  %v2660_v38 = vld [vmem:[#allocation2 + $0x2b0] ss:$8 sps:$4 sm:$0xff]  }
  0x2d   :  { %927 = vmatprep.subr.bf16.mxu0 %v2600_v17  ;;  %v2744_v16 = vld [vmem:[#allocation2 + $0xc4] ss:$8 sps:$4 sm:$0xff]   ;;  %v2758_v28 = vld [vmem:[#allocation2 + $0xe0] ss:$8 sps:$4 sm:$0xff]   ;;  %v2762_v30 = vld [vmem:[#allocation2 + $0xf4] ss:$8 sps:$4 sm:$0xff]  }
  0x2e   :  { %v76_v17 = vld [vmem:[%s3308_s0 + $0x48] sm:$0xff]  ;;  %v2668_v41 = vld [vmem:[#allocation2 + $0x2d4] ss:$8 sps:$4 sm:$0xff]   ;;  %v2675_v46 = vld [vmem:[#allocation2 + $0x2f0] ss:$8 sps:$4 sm:$0xff]  }
  0x2f   :  { %881 = vmatpush1.bf16.msra.mxu1 %v2704_v52  ;;  %v2659_v31 = vld [vmem:[#allocation2 + $0x2a4] ss:$8 sps:$4 sm:$0xff]   ;;  %v2657_v35 = vld [vmem:[#allocation2 + $0x2a0] ss:$8 sps:$4 sm:$0xff]   ;;  %v74_v50 = vld [vmem:[%s3308_s0 + $0x38] sm:$0xff] }
  0x30   :  { %928 = vmatpush1.bf16.msra.mxu0 %v2602_v18  ;;  %882 = vmatprep.subr.bf16.mxu1 %v2708_v56  ;;  %v2650_v18 = vld [vmem:[#allocation2 + $0x274] ss:$8 sps:$4 sm:$0xff]   ;;  %v2665_v39 = vld [vmem:[#allocation2 + $0x2c4] ss:$8 sps:$4 sm:$0xff]   ;;  %v2669_v44 = vld [vmem:[#allocation2 + $0x2e0] ss:$8 sps:$4 sm:$0xff]  }
  0x31   :  { %929 = vmatprep.subr.bf16.mxu0 %v2603_v19  ;;  %v84_v19 = vpack.c.bf16 %v76_v17, %v68_v14  ;;  %v71_v47 = vld [vmem:[%s3308_s0 + $0x20] sm:$0xff]  ;;  %v2687_v56 = vld [vmem:[#allocation2 + $0x310] ss:$8 sps:$4 sm:$0xff]  }
  0x32   :  { %v79_v48 = vld [vmem:[%s3308_s0 + $0x60] sm:$0xff] }
  0x33   :  { %883 = vmatpush1.bf16.msra.mxu1 %v2710_v57  ;;  %902 = vmatprep.mubr.bf16.mxu1 %v84_v19  ;;  %v2683_v49 = vld [vmem:[#allocation2 + $0x304] ss:$8 sps:$4 sm:$0xff]   ;;  %v87_v52 = vpack.c.bf16 %v79_v48, %v71_v47  ;;  %v2753_v14 = vld [vmem:[#allocation2 + $0x3c0] ss:$8 sps:$4 sm:$0xff]   ;;  %v2770_v19 = vld [vmem:[#allocation2 + $0x3f4] ss:$8 sps:$4 sm:$0xff]  }
  0x34   :  { %930 = vmatpush1.bf16.msra.mxu0 %v2605_v20  ;;  %884 = vmatprep.subr.bf16.mxu1 %v2714_v59  ;;  %v2746_v20 = vld [vmem:[#allocation2 + $0xc0] ss:$8 sps:$4 sm:$0xff]   ;;  %v2695_v57 = vld [vmem:[#allocation2 + $0x324] ss:$8 sps:$4 sm:$0xff]   ;;  %v2701_v59 = vld [vmem:[#allocation2 + $0x334] ss:$8 sps:$4 sm:$0xff]  }
  0x35   :  { %931 = vmatprep.subr.bf16.mxu0 %v2606_v21  ;;  %v2648_v21 = vld [vmem:[#allocation2 + $0x270] ss:$8 sps:$4 sm:$0xff]   ;;  %v2767_v17 = vld [vmem:[#allocation2 + $0x3e4] ss:$8 sps:$4 sm:$0xff]  }
  0x36   :  { %v1138_v47 = vld [vmem:[%s3313_s5 + $0x90] sm:$0xff]  ;;  %v1139_v48 = vld [vmem:[%s3313_s5 + $0x98] sm:$0xff] }
  0x37   :  { %885 = vmatpush1.bf16.msra.mxu1 %v2716_v61  ;;  %v2707_v61 = vld [vmem:[#allocation2 + $0x344] ss:$8 sps:$4 sm:$0xff]  }
  0x38   :  { %932 = vmatpush1.bf16.msra.mxu0 %v2608_v22  ;;  %886 = vmatprep.subr.bf16.mxu1 %v2720_v63  ;;  %v2750_v22 = vld [vmem:[#allocation2 + $0xd4] ss:$8 sps:$4 sm:$0xff]  }
  0x39   :  { %933 = vmatprep.subr.bf16.mxu0 %v2609_v23  ;;  %v2653_v23 = vld [vmem:[#allocation2 + $0x284] ss:$8 sps:$4 sm:$0xff]   ;;  %v2713_v63 = vld [vmem:[#allocation2 + $0x354] ss:$8 sps:$4 sm:$0xff]  }
  0x3b   :  { %887 = vmatpush1.bf16.msra.mxu1 %v2722_v1  ;;  %v2719_v1 = vld [vmem:[#allocation2 + $0x364] ss:$8 sps:$4 sm:$0xff]  }
  0x3c   :  { %934 = vmatpush1.bf16.msra.mxu0 %v2611_v24  ;;  %888 = vmatprep.subr.bf16.mxu1 %v2726_v3  ;;  %v2752_v24 = vld [vmem:[#allocation2 + $0xd0] ss:$8 sps:$4 sm:$0xff]   ;;  %v2725_v3 = vld [vmem:[#allocation2 + $0x374] ss:$8 sps:$4 sm:$0xff]  }
  0x3d   :  { %935 = vmatprep.subr.bf16.mxu0 %v2612_v25  ;;  %v2651_v25 = vld [vmem:[#allocation2 + $0x280] ss:$8 sps:$4 sm:$0xff]  }
  0x3f   :  { %889 = vmatpush1.bf16.msra.mxu1 %v2728_v5  ;;  %v2731_v5 = vld [vmem:[#allocation2 + $0x384] ss:$8 sps:$4 sm:$0xff]  }
  0x40   :  { %936 = vmatpush1.bf16.msra.mxu0 %v2614_v26  ;;  %890 = vmatprep.subr.bf16.mxu1 %v2732_v7  ;;  %v2756_v26 = vld [vmem:[#allocation2 + $0xe4] ss:$8 sps:$4 sm:$0xff]   ;;  %v2737_v7 = vld [vmem:[#allocation2 + $0x394] ss:$8 sps:$4 sm:$0xff]  }
  0x41   :  { %937 = vmatprep.subr.bf16.mxu0 %v2615_v29  ;;  %v2654_v29 = vld [vmem:[#allocation2 + $0x290] ss:$8 sps:$4 sm:$0xff]  }
  0x43   :  { %891 = vmatpush1.bf16.msra.mxu1 %v2734_v9  ;;  %v2743_v9 = vld [vmem:[#allocation2 + $0x3a4] ss:$8 sps:$4 sm:$0xff]  }
  0x44   :  { %938 = vmatpush1.bf16.msra.mxu0 %v2617_v32  ;;  %892 = vmatprep.subr.bf16.mxu1 %v2738_v11  ;;  %v2764_v32 = vld [vmem:[#allocation2 + $0xf0] ss:$8 sps:$4 sm:$0xff]   ;;  %v2749_v11 = vld [vmem:[#allocation2 + $0x3b4] ss:$8 sps:$4 sm:$0xff]  }
  0x45   :  { %939 = vmatprep.subr.bf16.mxu0 %v2618_v33  ;;  %v67_v33 = vld [vmem:[%s3308_s0] sm:$0xff] }
  0x47   :  { %893 = vmatpush1.bf16.msra.mxu1 %v2740_v13  ;;  %v2755_v13 = vld [vmem:[#allocation2 + $0x3c4] ss:$8 sps:$4 sm:$0xff]  }
  0x48   :  { %940 = vmatpush1.bf16.msra.mxu0 %v2620_v36  ;;  %894 = vmatprep.subr.bf16.mxu1 %v2744_v16  ;;  %v2662_v36 = vld [vmem:[#allocation2 + $0x2b4] ss:$8 sps:$4 sm:$0xff]   ;;  %v2759_v16 = vld [vmem:[#allocation2 + $0x3d0] ss:$8 sps:$4 sm:$0xff]  }
  0x49   :  { %941 = vmatprep.subr.bf16.mxu0 %v2621_v37  ;;  %v83_v37 = vpack.c.bf16 %v75_v34, %v67_v33 }
  0x4b   :  { %895 = vmatpush1.bf16.msra.mxu1 %v2746_v20  ;;  %v2768_v20 = vld [vmem:[#allocation2 + $0x3f0] ss:$8 sps:$4 sm:$0xff]  }
  0x4c   :  { %942 = vmatpush1.bf16.msra.mxu0 %v2623_v40  ;;  %896 = vmatprep.subr.bf16.mxu1 %v2750_v22  ;;  %v2663_v40 = vld [vmem:[#allocation2 + $0x2c0] ss:$8 sps:$4 sm:$0xff]   ;;  %v81_v22 = vld [vmem:[%s3308_s0 + $0x70] sm:$0xff] }
  0x4d   :  { %943 = vmatprep.subr.bf16.mxu0 %v2624_v42  ;;  %v2666_v42 = vld [vmem:[#allocation2 + $0x2d0] ss:$8 sps:$4 sm:$0xff]  }
  0x4f   :  { %897 = vmatpush1.bf16.msra.mxu1 %v2752_v24  ;;  %v2818_v24 = vmov 0.0  }
  0x50   :  { %944 = vmatpush1.bf16.msra.mxu0 %v2626_v43  ;;  %898 = vmatprep.subr.bf16.mxu1 %v2756_v26  ;;  %v2671_v43 = vld [vmem:[#allocation2 + $0x2e4] ss:$8 sps:$4 sm:$0xff]  }
  0x51   :  { %956 = vmatprep.subr.bf16.mxu0 %v2629_v45  ;;  %v2677_v45 = vld [vmem:[#allocation2 + $0x2f4] ss:$8 sps:$4 sm:$0xff]  }
  0x53   :  { %946 = vmatmul.mubr.bf16.vlgmr.msra.gmra.mrb[0].mxu0 %v85_v51  ;;  %899 = vmatpush1.bf16.msra.mxu1 %v2758_v28  ;;  %v82_v51 = vld [vmem:[%s3308_s0 + $0x78] sm:$0xff]  ;;  %v43_v28 = vld [vmem:[%s3315_s7] ss:$8 sm:$0x3] }
  0x54   :  { %957 = vmatpush1.bf16.msra.mxu0 %v2627_v53  ;;  %988 = vmatprep.mubr.bf16.mxu0 %v88_v55  ;;  %v2681_v53 = vld [vmem:[#allocation2 + $0x300] ss:$8 sps:$4 sm:$0xff]   ;;  %v2689_v55 = vld [vmem:[#allocation2 + $0x314] ss:$8 sps:$4 sm:$0xff]  }
  0x55   :  { %958 = vmatprep.subr.bf16.mxu0 %v2632_v54  ;;  %900 = vmatprep.subr.bf16.mxu1 %v2762_v30  ;;  %v90_v54 = vpack.c.bf16 %v82_v51, %v74_v50 }
  0x57   :  { %901 = vmatpush1.bf16.msra.mxu1 %v2764_v32 }
  0x58   :  { %959 = vmatpush1.bf16.msra.mxu0 %v2630_v58  ;;  %v2693_v58 = vld [vmem:[#allocation2 + $0x320] ss:$8 sps:$4 sm:$0xff]  }
  0x59   :  { %960 = vmatprep.subr.bf16.mxu0 %v2635_v60  ;;  %v2699_v60 = vld [vmem:[#allocation2 + $0x330] ss:$8 sps:$4 sm:$0xff]  }
  0x5a   :  { %903 = vmatmul.mubr.bf16.vlgmr.msra.gmra.mrb[0].mxu1 %v83_v37 }
  0x5b   :  { %1111 = vmatprep.mubr.f32.mxu1 %v2818_v24 }
  0x5c   :  { %961 = vmatpush1.bf16.msra.mxu0 %v2633_v62  ;;  %v2705_v62 = vld [vmem:[#allocation2 + $0x340] ss:$8 sps:$4 sm:$0xff]  }
  0x5d   :  { %962 = vmatprep.subr.bf16.mxu0 %v2638_v0  ;;  %v2711_v0 = vld [vmem:[#allocation2 + $0x350] ss:$8 sps:$4 sm:$0xff]  }
  0x60   :  { %963 = vmatpush1.bf16.msra.mxu0 %v2636_v2  ;;  %v2717_v2 = vld [vmem:[#allocation2 + $0x360] ss:$8 sps:$4 sm:$0xff]  }
  0x61   :  { %964 = vmatprep.subr.bf16.mxu0 %v2641_v4  ;;  %v2723_v4 = vld [vmem:[#allocation2 + $0x370] ss:$8 sps:$4 sm:$0xff]  }
  0x64   :  { %965 = vmatpush1.bf16.msra.mxu0 %v2639_v6  ;;  %v2729_v6 = vld [vmem:[#allocation2 + $0x380] ss:$8 sps:$4 sm:$0xff]  }
  0x65   :  { %966 = vmatprep.subr.bf16.mxu0 %v2644_v8  ;;  %v2735_v8 = vld [vmem:[#allocation2 + $0x390] ss:$8 sps:$4 sm:$0xff]  }
  0x68   :  { %967 = vmatpush1.bf16.msra.mxu0 %v2642_v10  ;;  %v2741_v10 = vld [vmem:[#allocation2 + $0x3a0] ss:$8 sps:$4 sm:$0xff]  }
  0x69   :  { %968 = vmatprep.subr.bf16.mxu0 %v2647_v12  ;;  %v2747_v12 = vld [vmem:[#allocation2 + $0x3b0] ss:$8 sps:$4 sm:$0xff]  }
  0x6c   :  { %969 = vmatpush1.bf16.msra.mxu0 %v2645_v15  ;;  %v2761_v15 = vld [vmem:[#allocation2 + $0x3d4] ss:$8 sps:$4 sm:$0xff]  }
  0x6d   :  { %970 = vmatprep.subr.bf16.mxu0 %v2650_v18  ;;  %v2765_v18 = vld [vmem:[#allocation2 + $0x3e0] ss:$8 sps:$4 sm:$0xff]  }
  0x70   :  { %971 = vmatpush1.bf16.msra.mxu0 %v2648_v21  ;;  %v73_v21 = vld [vmem:[%s3308_s0 + $0x30] sm:$0xff] }
  0x71   :  { %972 = vmatprep.subr.bf16.mxu0 %v2653_v23  ;;  %v89_v23 = vpack.c.bf16 %v81_v22, %v73_v21  ;;  %v1149_v21 = vld [vmem:[%s3313_s5 + $0xe8] sm:$0xff] }
  0x74   :  { %973 = vmatpush1.bf16.msra.mxu0 %v2651_v25  ;;  %v220_v25 = vlaneseq }
  0x75   :  { %974 = vmatprep.subr.bf16.mxu0 %v2656_v27 }
  0x76   :  { %v2929_v26 = vshrl.u32 %v220_v25, 7 }
  0x78   :  { %975 = vmatpush1.bf16.msra.mxu0 %v2654_v29  ;;  %v2932_v27 = vsub.s32 0, %v2929_v26  ;;  %v226_v29 = vsub.s32 1, %v2929_v26 }
  0x79   :  { %976 = vmatprep.subr.bf16.mxu0 %v2659_v31 }
  0x7a   :  { %v223_v30 = vrot.slane %v43_v28, %v2932_v27  ;;  %v227_v32 = vrot.slane %v43_v28, %v226_v29  ;;  %v1132_v28 = vld [vmem:[%s3313_s5 + $0x60] sm:$0xff] }
  0x7c   :  { %977 = vmatpush1.bf16.msra.mxu0 %v2657_v35 }
  0x7d   :  { %978 = vmatprep.subr.bf16.mxu0 %v2662_v36 }
  0x80   :  { %979 = vmatpush1.bf16.msra.mxu0 %v2660_v38 }
  0x81   :  { %980 = vmatprep.subr.bf16.mxu0 %v2665_v39 }
  0x84   :  { %981 = vmatpush1.bf16.msra.mxu0 %v2663_v40  ;;  %v1136_v40 = vld [vmem:[%s3313_s5 + $0x80] sm:$0xff] }
  0x85   :  { %982 = vmatprep.subr.bf16.mxu0 %v2668_v41  ;;  %v1137_v41 = vld [vmem:[%s3313_s5 + $0x88] sm:$0xff] }
  0x86   :  { %v2959_v51 = vpack.c.bf16 %v1137_v41, %v1136_v40 }
  0x88   :  { %983 = vmatpush1.bf16.msra.mxu0 %v2666_v42 }
  0x89   :  { %984 = vmatprep.subr.bf16.mxu0 %v2671_v43  ;;  %v1120_v43 = vld [vmem:[%s3313_s5] sm:$0xff] }
  0x8c   :  { %985 = vmatpush1.bf16.msra.mxu0 %v2669_v44  ;;  %v1121_v44 = vld [vmem:[%s3313_s5 + $0x8] sm:$0xff] }
  0x8d   :  { %986 = vmatprep.subr.bf16.mxu0 %v2677_v45 }
  0x90   :  { %987 = vmatpush1.bf16.msra.mxu0 %v2675_v46 }
  0x91   :  { %999 = vmatprep.subr.bf16.mxu0 %v2683_v49 }
  0x93   :  { %989 = vmatmul.mubr.bf16.vlgmr.msra.gmra.mrb[0].mxu0 %v87_v52 }
  0x94   :  { %1000 = vmatpush1.bf16.msra.mxu0 %v2681_v53  ;;  %1031 = vmatprep.mubr.bf16.mxu0 %v90_v54  ;;  %v2966_v54 = vld [vmem:[%s3309_s1] sm:$0xff] }
  0x95   :  { %1001 = vmatprep.subr.bf16.mxu0 %v2689_v55  ;;  %v2968_v55 = vpack.c.bf16 %v1121_v44, %v1120_v43  ;;  %v2820_v43 = vmov 0  }
  0x96   :  { %2578 = vset.pattern.permute.xlu0 %v2820_v43 }
  0x98   :  { %1002 = vmatpush1.bf16.msra.mxu0 %v2687_v56 }
  0x99   :  { %1003 = vmatprep.subr.bf16.mxu0 %v2695_v57  ;;  %v2972_v57 = vpack.c.bf16 %v1139_v48, %v1138_v47  ;;  %v3112_v47 = vld [vmem:[%s3315_s7 + $0x1] ss:$0 sm:$0xff] }
  0x9c   :  { %1004 = vmatpush1.bf16.msra.mxu0 %v2693_v58  ;;  %v1122_v58 = vld [vmem:[%s3313_s5 + $0x10] sm:$0xff] }
  0x9d   :  { %1005 = vmatprep.subr.bf16.mxu0 %v2701_v59  ;;  %v1123_v59 = vld [vmem:[%s3313_s5 + $0x18] sm:$0xff] }
  0xa0   :  { %1006 = vmatpush1.bf16.msra.mxu0 %v2699_v60  ;;  %v1140_v60 = vld [vmem:[%s3313_s5 + $0xa0] sm:$0xff] }
  0xa1   :  { %1007 = vmatprep.subr.bf16.mxu0 %v2707_v61  ;;  %v1141_v61 = vld [vmem:[%s3313_s5 + $0xa8] sm:$0xff] }
  0xa4   :  { %1008 = vmatpush1.bf16.msra.mxu0 %v2705_v62  ;;  %v2990_v62 = vpack.c.bf16 %v1123_v59, %v1122_v58  ;;  %v54_v58 = vld [vmem:[%s3314_s6 + $0x28] sm:$0xff]  ;;  %v56_v59 = vld [vmem:[%s3314_s6 + $0x38] sm:$0xff] }
  0xa5   :  { %1009 = vmatprep.subr.bf16.mxu0 %v2713_v63  ;;  %v2993_v63 = vpack.c.bf16 %v1141_v61, %v1140_v60 }
  0xa8   :  { %1010 = vmatpush1.bf16.msra.mxu0 %v2711_v0  ;;  %v1124_v0 = vld [vmem:[%s3313_s5 + $0x20] sm:$0xff] }
  0xa9   :  { %1011 = vmatprep.subr.bf16.mxu0 %v2719_v1  ;;  %v1125_v1 = vld [vmem:[%s3313_s5 + $0x28] sm:$0xff] }
  0xac   :  { %1012 = vmatpush1.bf16.msra.mxu0 %v2717_v2  ;;  %v1142_v2 = vld [vmem:[%s3313_s5 + $0xb0] sm:$0xff] }
  0xad   :  { %1013 = vmatprep.subr.bf16.mxu0 %v2725_v3  ;;  %v1143_v3 = vld [vmem:[%s3313_s5 + $0xb8] sm:$0xff] }
  0xb0   :  { %1014 = vmatpush1.bf16.msra.mxu0 %v2723_v4  ;;  %v3008_v4 = vpack.c.bf16 %v1125_v1, %v1124_v0  ;;  %v3131_v1 = vpack.c.bf16 %v56_v59, %v54_v58 }
  0xb1   :  { %1015 = vmatprep.subr.bf16.mxu0 %v2731_v5  ;;  %v3011_v5 = vpack.c.bf16 %v1143_v3, %v1142_v2  ;;  %v53_v2 = vld [vmem:[%s3314_s6 + $0x20] sm:$0xff]  ;;  %v55_v3 = vld [vmem:[%s3314_s6 + $0x30] sm:$0xff] }
  0xb4   :  { %1016 = vmatpush1.bf16.msra.mxu0 %v2729_v6  ;;  %v1126_v6 = vld [vmem:[%s3313_s5 + $0x30] sm:$0xff] }
  0xb5   :  { %1017 = vmatprep.subr.bf16.mxu0 %v2737_v7  ;;  %v1127_v7 = vld [vmem:[%s3313_s5 + $0x38] sm:$0xff] }
  0xb8   :  { %1018 = vmatpush1.bf16.msra.mxu0 %v2735_v8  ;;  %v1144_v8 = vld [vmem:[%s3313_s5 + $0xc0] sm:$0xff] }
  0xb9   :  { %1019 = vmatprep.subr.bf16.mxu0 %v2743_v9  ;;  %v1145_v9 = vld [vmem:[%s3313_s5 + $0xc8] sm:$0xff] }
  0xbc   :  { %1020 = vmatpush1.bf16.msra.mxu0 %v2741_v10  ;;  %v3026_v10 = vpack.c.bf16 %v1127_v7, %v1126_v6  ;;  %v58_v6 = vld [vmem:[%s3314_s6 + $0x48] sm:$0xff]  ;;  %v60_v7 = vld [vmem:[%s3314_s6 + $0x58] sm:$0xff] }
  0xbd   :  { %1021 = vmatprep.subr.bf16.mxu0 %v2749_v11  ;;  %v3029_v11 = vpack.c.bf16 %v1145_v9, %v1144_v8  ;;  %v3149_v8 = vpack.c.bf16 %v55_v3, %v53_v2  ;;  %v3153_v9 = vpack.c.bf16 %v60_v7, %v58_v6  ;;  %v1910_v6 = vld [vmem:[%s3311_s3 + $0x8] sm:$0xff] }
  0xc0   :  { %1022 = vmatpush1.bf16.msra.mxu0 %v2747_v12  ;;  %v1128_v12 = vld [vmem:[%s3313_s5 + $0x40] sm:$0xff] }
  0xc1   :  { %1023 = vmatprep.subr.bf16.mxu0 %v2755_v13  ;;  %v1129_v13 = vld [vmem:[%s3313_s5 + $0x48] sm:$0xff] }
  0xc4   :  { %1024 = vmatpush1.bf16.msra.mxu0 %v2753_v14  ;;  %v1146_v14 = vld [vmem:[%s3313_s5 + $0xd0] sm:$0xff] }
  0xc5   :  { %1025 = vmatprep.subr.bf16.mxu0 %v2761_v15  ;;  %v1147_v15 = vld [vmem:[%s3313_s5 + $0xd8] sm:$0xff] }
  0xc8   :  { %1026 = vmatpush1.bf16.msra.mxu0 %v2759_v16  ;;  %v3044_v16 = vpack.c.bf16 %v1129_v13, %v1128_v12  ;;  %v57_v12 = vld [vmem:[%s3314_s6 + $0x40] sm:$0xff]  ;;  %v62_v13 = vld [vmem:[%s3314_s6 + $0x68] sm:$0xff] }
  0xc9   :  { %1027 = vmatprep.subr.bf16.mxu0 %v2767_v17  ;;  %v3047_v17 = vpack.c.bf16 %v1147_v15, %v1146_v14  ;;  %v64_v14 = vld [vmem:[%s3314_s6 + $0x78] sm:$0xff] }
  0xcc   :  { %1028 = vmatpush1.bf16.msra.mxu0 %v2765_v18  ;;  %v1130_v18 = vld [vmem:[%s3313_s5 + $0x50] sm:$0xff] }
  0xcd   :  { %1029 = vmatprep.subr.bf16.mxu0 %v2770_v19  ;;  %v1131_v19 = vld [vmem:[%s3313_s5 + $0x58] sm:$0xff] }
  0xce   :  { %v3062_v22 = vpack.c.bf16 %v1131_v19, %v1130_v18  ;;  %v3171_v18 = vpack.c.bf16 %v64_v14, %v62_v13  ;;  %v61_v19 = vld [vmem:[%s3314_s6 + $0x60] sm:$0xff]  ;;  %v2338_v13 = vld [vmem:[%s3309_s1 + $0x8] sm:$0xff] }
  0xd0   :  { %1030 = vmatpush1.bf16.msra.mxu0 %v2768_v20  ;;  %v1148_v20 = vld [vmem:[%s3313_s5 + $0xe0] sm:$0xff] }
  0xd3   :  { %1032 = vmatmul.mubr.bf16.vlgmr.msra.gmra.mrb[0].mxu0 %v89_v23  ;;  %v3065_v23 = vpack.c.bf16 %v1149_v21, %v1148_v20  ;;  %v63_v20 = vld [vmem:[%s3314_s6 + $0x70] sm:$0xff] }
  0xd4   :  { %v3180_v21 = vpack.c.bf16 %v63_v20, %v61_v19 }
 0x12d   :  { %v904_v31 = vpop.f32.mrb[0].mxu1 }
 0x12e   :  { %v906_v33 = vpop.f32.mrb[1].mxu1  ;;  %v905_v38 = vadd.f32 %v904_v31, %v223_v30 }
 0x12f   :  { %v908_v34 = vpop.f32.mrb[2].mxu1  ;;  %v907_v39 = vadd.f32 %v906_v33, %v227_v32  ;;  %v1151_v33 = vld [vmem:[%s3313_s5 + $0xf8] sm:$0xff] }
 0x130   :  { %v909_v35 = vadd.f32 %v908_v34, %v223_v30  ;;  %v910_v36 = vpop.f32.mrb[3].mxu1  ;;  %v1133_v30 = vld [vmem:[%s3313_s5 + $0x68] sm:$0xff] }
 0x131   :  { %v911_v37 = vadd.f32 %v910_v36, %v227_v32  ;;  %v3074_v31 = vpack.c.bf16 %v1133_v30, %v1132_v28  ;;  %v1150_v32 = vld [vmem:[%s3313_s5 + $0xf0] sm:$0xff]  ;;  %v1135_v36 = vld [vmem:[%s3313_s5 + $0x78] sm:$0xff]  ;;  %v3186_v28 = vand.u32 127, %v220_v25  ;;  %v2202_v25 = vld [vmem:[%s3314_s6 + $0x80] ss:$8 sm:$0x3] }
 0x132   :  { %v3084_v34 = vpack.c.bf16 %v1151_v33, %v1150_v32 }
 0x133   :  { %vm1327_vm2 = vcmp.eq.s32.totalorder %v3186_v28, 63 }
 0x1a6   :  { %v1033_v42 = vpop.f32.mrb[0].mxu0 }
 0x1a7   :  { %v2556_v45 = vadd.f32 %v1033_v42, %v905_v38  ;;  %v1035_v46 = vpop.f32.mrb[1].mxu0  ;;  %v1324_v42 = vld [vmem:[%s3311_s3] sm:$0xff] }
 0x1a8   :  { %v2558_v49 = vadd.f32 %v1035_v46, %v907_v39  ;;  %v1037_v50 = vpop.f32.mrb[2].mxu0  ;;  %1330 = vperm.xlu0 %2578, %v1324_v42   ;;  %v52_v46 = vld [vmem:[%s3314_s6 + $0x18] sm:$0xff] }
 0x1a9   :  { %v2961_v52 = vadd.f32 %v1037_v50, %v909_v35  ;;  %v1039_v53 = vpop.f32.mrb[3].mxu0  ;;  %v1134_v35 = vld [vmem:[%s3313_s5 + $0x70] sm:$0xff] }
 0x1aa   :  { %v2970_v56 = vadd.f32 %v1039_v53, %v911_v37  ;;  %1047 = vmatprep.subr.mxu1 %v2558_v49  ;;  %v3092_v37 = vpack.c.bf16 %v1135_v36, %v1134_v35  ;;  %v49_v49 = vld [vmem:[%s3314_s6] sm:$0xff]  ;;  %v51_v50 = vld [vmem:[%s3314_s6 + $0x10] sm:$0xff]  ;;  %v3198_v36 = vrot.slane %v2202_v25, %v2932_v27 }
 0x1ab   :  { %1048 = vmatpush1.msra.mxu1 %v2556_v45  ;;  %v50_v45 = vld [vmem:[%s3314_s6 + $0x8] sm:$0xff]  ;;  %v3129_v0 = vpack.c.bf16 %v51_v50, %v49_v49 }
 0x1ac   :  { %2331 = vmatmul.mubr.msk.f32.vlgmr.msra.gmra.mrb[4].mxu1 %vm1043_vm0, %v2966_v54  ;;  %2460 = vmatprep.subr.bf16.mxu1 %v2959_v51  ;;  %v3126_v60 = vpack.c.bf16 %v52_v46, %v50_v45  ;;  %v1420_v46 = vld [vmem:[%s3310_s2] sm:$0xff] }
 0x1ad   :  { %2462 = vmatpush3.bf16.msra.mxu1 %v2968_v55 }
 0x1ae   :  { %2464 = vmatprep.subr.bf16.mxu1 %v2972_v57 }
 0x1b1   :  { %2466 = vmatpush3.bf16.msra.mxu1 %v2990_v62 }
 0x1b2   :  { %2468 = vmatprep.subr.bf16.mxu1 %v2993_v63 }
 0x1b5   :  { %2470 = vmatpush3.bf16.msra.mxu1 %v3008_v4 }
 0x1b6   :  { %2472 = vmatprep.subr.bf16.mxu1 %v3011_v5 }
 0x1b9   :  { %2474 = vmatpush3.bf16.msra.mxu1 %v3026_v10 }
 0x1ba   :  { %2476 = vmatprep.subr.bf16.mxu1 %v3029_v11 }
 0x1bd   :  { %2478 = vmatpush3.bf16.msra.mxu1 %v3044_v16 }
 0x1be   :  { %2480 = vmatprep.subr.bf16.mxu1 %v3047_v17 }
 0x1c1   :  { %2482 = vmatpush3.bf16.msra.mxu1 %v3062_v22 }
 0x1c2   :  { %2484 = vmatprep.subr.bf16.mxu1 %v3065_v23 }
 0x1c5   :  { %2486 = vmatpush3.bf16.msra.mxu1 %v3074_v31 }
 0x1c6   :  { %2488 = vmatprep.subr.bf16.mxu1 %v3084_v34 }
 0x1c9   :  { %2490 = vmatpush3.bf16.msra.mxu1 %v3092_v37 }
 0x1ca   :  { %2429 = vmatprep.subr.mxu1 %v2818_v24 }
 0x227   :  { %v1331_v30 = vpop.permute.xlu0 %1330 }
 0x27f   :  { %v1113_v38 = vpop.f32.mrb[4].mxu1 }
 0x280   :  { %v1115_v39 = vpop.f32.mrb[5].mxu1  ;;  %v1118_v41 = vmax.f32 %v1113_v38, 0.0 }
 0x281   :  { %v1119_v40 = vmax.f32 %v1115_v39, 0.0 }
 0x283   :  { %1216 = vmatprep.mubr.f32.mxu1 %v1119_v40 }
 0x284   :  { %1217 = vmatmul.mubr.f32.vlgmr.msra.gmra.mrb[6].mxu1 %v1118_v41  ;;  %v3204_v41 = vrot.slane %v2202_v25, %v226_v29 }
 0x285   :  { %2431 = vmatprep.mubr.msk.f32.mxu1 %vm2819_vm1, %v2818_v24 }
 0x357   :  { %v2379_v44 = vpop.f32.mrb[6].mxu1 }
 0x358   :  { %v2380_v48 = vpop.f32.mrb[7].mxu1 }
 0x359   :  { %v2381_v53 = vadd.f32 %v2380_v48, %v2379_v44 }
 0x35b   :  { %v1219_v61 = vadd.f32 %v2381_v53, %v3112_v47 }
 0x35d   :  { %2430 = vmatpush3.msra.mxu1 %v1219_v61 }
 0x35e   :  { %2432 = vmatmul.mubr.msk.f32.vlgmr.msra.gmra.mrb[8].mxu1 %vm1043_vm0, %v2966_v54  ;;  %2492 = vmatprep.subr.bf16.mxu1 %v3126_v60  ;;  %v59_v54 = vld [vmem:[%s3314_s6 + $0x50] sm:$0xff] }
 0x35f   :  { %2494 = vmatpush1.bf16.msra.mxu1 %v3129_v0  ;;  %1413 = vmatprep.mubr.f32.mxu1 %v2818_v24  ;;  %v3168_v15 = vpack.c.bf16 %v59_v54, %v57_v12 }
 0x360   :  { %2496 = vmatprep.subr.bf16.mxu1 %v3131_v1 }
 0x363   :  { %2498 = vmatpush1.bf16.msra.mxu1 %v3149_v8 }
 0x364   :  { %2500 = vmatprep.subr.bf16.mxu1 %v3153_v9 }
 0x367   :  { %2502 = vmatpush1.bf16.msra.mxu1 %v3168_v15 }
 0x368   :  { %2504 = vmatprep.subr.bf16.mxu1 %v3171_v18 }
 0x36b   :  { %2506 = vmatpush1.bf16.msra.mxu1 %v3180_v21 }
 0x36c   :  { %2434 = vmatprep.subr.mxu1 %v2818_v24 }
 0x431   :  { %v1288_v32 = vpop.f32.mrb[8].mxu1 }
 0x432   :  { %v1333_v33 = vsel %vm1327_vm2, %v1331_v30, %v1288_v32  ;;  %v2433_v35 = vpop.f32.mrb[9].mxu1  ;;  %1292 = vxpose.xlu1.b32.start.end [1/1] (short) (narrow) %v1288_v32, 8 }
 0x433   :  { %2333 = vmatmul.mubr.msk.f32.vlgmr.msra.gmra.mrb[10].mxu1 %vm1345_vm3, %v1333_v33 }
 0x434   :  { %2436 = vmatprep.mubr.msk.f32.mxu1 %vm2819_vm1, %v2818_v24 }
 0x4b2   :  { %v1308_v45 = vpop.trf.xlu1 }
 0x4b3   :  { %vm1498_vm4 = vcmp.eq.f32.partialorder %v1308_v45, 0.0 }
 0x4b4   :  { %v1499_v26 = vsel %vm1498_vm4, 1, %v2820_v43 }
 0x4b5   :  { %v1503_v29 = vrot.slane %v1499_v26, %v2932_v27 }
 0x4b7   :  { %vm1504_vm5 = vcmp.eq.s32.totalorder %v1503_v29, 1 }
 0x506   :  { %v1415_v38 = vpop.f32.mrb[10].mxu1 }
 0x507   :  { %v1416_v39 = vadd.f32 %v1415_v38, %v3198_v36  ;;  %v1417_v40 = vpop.f32.mrb[11].mxu1 }
 0x508   :  { %v1418_v44 = vadd.f32 %v1417_v40, %v3204_v41 }
 0x509   :  { %1422 = vrot.lane.b32.xlu0 %v1416_v39, %s2821_s12 }
 0x57b   :  { %v1423_v42 = vpop.permute.xlu0 %1422 }
 0x57c   :  { %2435 = vmatpush3.xpose.msk.msra.mxu1 %vm1345_vm3, %v1423_v42 }
 0x57d   :  { %2439 = vmatprep.subr.mxu1 %v2818_v24 }
 0x57f   :  { %2437 = vmatmul.mubr.msk.f32.vlgmr.msra.gmra.mrb[12].mxu1 %vm1345_vm3, %v1416_v39 }
 0x580   :  { %2440 = vmatpush3.msra.mxu1 %v1418_v44  ;;  %2441 = vmatprep.mubr.msk.f32.mxu1 %vm2819_vm1, %v2818_v24 }
 0x581   :  { %1633 = vmatprep.subr.mxu1 %v2970_v56 }
 0x652   :  { %v1494_v48 = vpop.f32.mrb[12].mxu1 }
 0x653   :  { %v1495_v49 = vadd.f32 %v1494_v48, %v1420_v46  ;;  %v2438_v50 = vpop.f32.mrb[13].mxu1 }
 0x655   :  { %v1505_v53 = vsel %vm1504_vm5, -1e+09, %v1495_v49 }
 0x656   :  { %v1506_v58 = vsel %vm1043_vm0, %v1505_v53, -inf }
 0x657   :  { %1507 = vmax.xlane.f32.xlu1 %v1506_v58 }
 0x6e4   :  { %v1508_v59 = vpop.xlane.xlu1 %1507 }
 0x6e5   :  { %v1509_v56 = vsub.f32 %v1505_v53, %v1508_v59 }
 0x6e7   :  { %v1510_v61 = vmul.f32 1.442695, %v1509_v56 }
 0x6e9   :  { %2771 = vpow2.f32 %v1510_v61 }
 0x6f3   :  { %v2772_v2 = vpop.eup %2771 }
 0x6f4   :  { %v1512_v3 = vsel %vm1043_vm0, %v2772_v2, 0.0 }
 0x6f5   :  { %1513 = vadd.xlane.f32.xlu0 %v1512_v3 }
 0x70b   :  { %1913 = vperm.xlu0 %2578, %v1910_v6  }
 0x782   :  { %v1514_v7 = vpop.xlane.xlu0 %1513 }
 0x783   :  { %2773 = vrcp.f32 %v1514_v7 }
 0x78d   :  { %v2774_v12 = vpop.eup %2773 }
 0x78e   :  { %v1516_v54 = vmul.f32 %v2774_v12, %v2772_v2 }
 0x790   :  { %2442 = vmatmul.mubr.msk.f32.vlgmr.msra.gmra.mrb[14].mxu1 %vm1043_vm0, %v1516_v54 }
 0x791   :  { %1634 = vmatpush1.msra.mxu1 %v2961_v52  ;;  %1697 = vmatprep.mubr.f32.mxu1 %v2818_v24 }
 0x792   :  { %2508 = vmatprep.subr.bf16.mxu1 %v2959_v51 }
 0x794   :  { %2339 = vmatmul.mubr.msk.f32.vlgmr.msra.gmra.mrb[16].mxu1 %vm1043_vm0, %v2338_v13 }
 0x795   :  { %2510 = vmatpush3.bf16.msra.mxu1 %v2968_v55 }
 0x796   :  { %2512 = vmatprep.subr.bf16.mxu1 %v2972_v57 }
 0x799   :  { %2514 = vmatpush3.bf16.msra.mxu1 %v2990_v62 }
 0x79a   :  { %2516 = vmatprep.subr.bf16.mxu1 %v2993_v63 }
 0x79d   :  { %2518 = vmatpush3.bf16.msra.mxu1 %v3008_v4 }
 0x79e   :  { %2520 = vmatprep.subr.bf16.mxu1 %v3011_v5 }
 0x7a1   :  { %2522 = vmatpush3.bf16.msra.mxu1 %v3026_v10 }
 0x7a2   :  { %2524 = vmatprep.subr.bf16.mxu1 %v3029_v11 }
 0x7a5   :  { %2526 = vmatpush3.bf16.msra.mxu1 %v3044_v16  ;;  %v1914_v16 = vpop.permute.xlu0 %1913 }
 0x7a6   :  { %2528 = vmatprep.subr.bf16.mxu1 %v3047_v17 }
 0x7a9   :  { %2530 = vmatpush3.bf16.msra.mxu1 %v3062_v22 }
 0x7aa   :  { %2532 = vmatprep.subr.bf16.mxu1 %v3065_v23 }
 0x7ad   :  { %2534 = vmatpush3.bf16.msra.mxu1 %v3074_v31 }
 0x7ae   :  { %2536 = vmatprep.subr.bf16.mxu1 %v3084_v34 }
 0x7b1   :  { %2538 = vmatpush3.bf16.msra.mxu1 %v3092_v37 }
 0x7b2   :  { %2444 = vmatprep.subr.mxu1 %v2818_v24 }
 0x863   :  { %v1586_v51 = vpop.f32.mrb[14].mxu1 }
 0x864   :  { %v2443_v52 = vpop.f32.mrb[15].mxu1 }
 0x867   :  { %v1699_v55 = vpop.f32.mrb[16].mxu1 }
 0x868   :  { %v1701_v57 = vpop.f32.mrb[17].mxu1  ;;  %v1704_v63 = vmax.f32 %v1699_v55, 0.0  ;;  %v45_v55 = vld [vmem:[%s3315_s7 + $0x2] ss:$0 sm:$0xff] }
 0x869   :  { %v1705_v62 = vmax.f32 %v1701_v57, 0.0 }
 0x86b   :  { %1802 = vmatprep.mubr.f32.mxu1 %v1705_v62 }
 0x86c   :  { %1803 = vmatmul.mubr.f32.vlgmr.msra.gmra.mrb[18].mxu1 %v1704_v63  ;;  %v46_v63 = vld [vmem:[%s3315_s7 + $0x3] ss:$0 sm:$0xff] }
 0x86d   :  { %2446 = vmatprep.mubr.msk.f32.mxu1 %vm2819_vm1, %v2818_v24 }
 0x93f   :  { %v2420_v4 = vpop.f32.mrb[18].mxu1 }
 0x940   :  { %v2421_v5 = vpop.f32.mrb[19].mxu1 }
 0x941   :  { %v2422_v10 = vadd.f32 %v2421_v5, %v2420_v4 }
 0x943   :  { %v1805_v11 = vadd.f32 %v2422_v10, %v3112_v47 }
 0x945   :  { %2445 = vmatpush3.msra.mxu1 %v1805_v11  ;;  %v47_v11 = vld [vmem:[%s3315_s7 + $0x4] ss:$0 sm:$0xff] }
 0x946   :  { %2447 = vmatmul.mubr.msk.f32.vlgmr.msra.gmra.mrb[20].mxu1 %vm1043_vm0, %v2338_v13  ;;  %2540 = vmatprep.subr.bf16.mxu1 %v3126_v60 }
 0x947   :  { %2542 = vmatpush1.bf16.msra.mxu1 %v3129_v0  ;;  %1984 = vmatprep.mubr.f32.mxu1 %v2818_v24 }
 0x948   :  { %2544 = vmatprep.subr.bf16.mxu1 %v3131_v1 }
 0x94b   :  { %2546 = vmatpush1.bf16.msra.mxu1 %v3149_v8 }
 0x94c   :  { %2548 = vmatprep.subr.bf16.mxu1 %v3153_v9  ;;  %v2342_v9 = vld [vmem:[%s3310_s2 + $0x8] sm:$0xff] }
 0x94f   :  { %2550 = vmatpush1.bf16.msra.mxu1 %v3168_v15 }
 0x950   :  { %2552 = vmatprep.subr.bf16.mxu1 %v3171_v18 }
 0x953   :  { %2554 = vmatpush1.bf16.msra.mxu1 %v3180_v21 }
 0x954   :  { %2449 = vmatprep.subr.mxu1 %v2818_v24 }
 0xa19   :  { %v1874_v17 = vpop.f32.mrb[20].mxu1 }
 0xa1a   :  { %v1916_v22 = vsel %vm1327_vm2, %v1914_v16, %v1874_v17  ;;  %v2448_v23 = vpop.f32.mrb[21].mxu1 }
 0xa1b   :  { %2341 = vmatmul.mubr.msk.f32.vlgmr.msra.gmra.mrb[22].mxu1 %vm1345_vm3, %v1916_v22 }
 0xa1c   :  { %2451 = vmatprep.mubr.msk.f32.mxu1 %vm2819_vm1, %v2818_v24 }
 0xaee   :  { %v1986_v31 = vpop.f32.mrb[22].mxu1 }
 0xaef   :  { %v1987_v34 = vadd.f32 %v1986_v31, %v3198_v36  ;;  %v1988_v37 = vpop.f32.mrb[23].mxu1 }
 0xaf0   :  { %v1989_v60 = vadd.f32 %v1988_v37, %v3204_v41  ;;  %v48_v37 = vld [vmem:[%s3315_s7 + $0x5] ss:$0 sm:$0xff] }
 0xaf1   :  { %1994 = vrot.lane.b32.xlu1 %v1987_v34, %s2821_s12 }
 0xb1a   :  { %1878 = vxpose.xlu1.b32.start.end [1/1] (short) (narrow) %v1874_v17, 8 }
 0xb63   :  { %v1995_v47 = vpop.permute.xlu1 %1994 }
 0xb64   :  { %2450 = vmatpush3.xpose.msk.msra.mxu1 %vm1345_vm3, %v1995_v47 }
 0xb65   :  { %2454 = vmatprep.subr.mxu1 %v2818_v24 }
 0xb67   :  { %2452 = vmatmul.mubr.msk.f32.vlgmr.msra.gmra.mrb[24].mxu1 %vm1345_vm3, %v1987_v34 }
 0xb68   :  { %2455 = vmatpush3.msra.mxu1 %v1989_v60  ;;  %2456 = vmatprep.mubr.msk.f32.mxu1 %vm2819_vm1, %v2818_v24  ;;  %v1590_v24 = vsel %vm1345_vm3, %v1586_v51, 0.0 }
 0xb69   :  { %v1591_v21 = vrot.slane %v1590_v24, 4 }
 0xb6b   :  { %v1592_v28 = vadd.f32 %v1591_v21, %v1590_v24 }
 0xb6d   :  { %v1593_v30 = vrot.slane %v1592_v28, 2 }
 0xb6f   :  { %v1594_v33 = vadd.f32 %v1593_v30, %v1592_v28 }
 0xb71   :  { %v1595_v35 = vrot.slane %v1594_v33, 1 }
 0xb73   :  { %v1596_v25 = vadd.f32 %v1595_v35, %v1594_v33 }
 0xb75   :  { %v1598_v39 = vmul.f32 0.125, %v1596_v25 }
 0xb77   :  { %v1599_v40 = vsel %vm1345_vm3, %v1598_v39, 0.0 }
 0xb9a   :  { %v1894_v0 = vpop.trf.xlu1 }
 0xb9b   :  { %vm2070_vm6 = vcmp.eq.f32.partialorder %v1894_v0, 0.0 }
 0xb9c   :  { %v2071_v1 = vsel %vm2070_vm6, 1, %v2820_v43 }
 0xb9d   :  { %v2075_v8 = vrot.slane %v2071_v1, %v2932_v27 }
 0xb9f   :  { %vm2076_vm7 = vcmp.eq.s32.totalorder %v2075_v8, 1 }
 0xc3a   :  { %v2066_v14 = vpop.f32.mrb[24].mxu1 }
 0xc3b   :  { %v2067_v15 = vadd.f32 %v2342_v9, %v2066_v14  ;;  %v2453_v18 = vpop.f32.mrb[25].mxu1 }
 0xc3d   :  { %v2077_v19 = vsel %vm2076_vm7, -1e+09, %v2067_v15 }
 0xc3e   :  { %v2078_v20 = vsel %vm1043_vm0, %v2077_v19, -inf }
 0xc3f   :  { %2079 = vmax.xlane.f32.xlu0 %v2078_v20 }
 0xccc   :  { %v2080_v43 = vpop.xlane.xlu0 %2079 }
 0xccd   :  { %v2081_v32 = vsub.f32 %v2077_v19, %v2080_v43 }
 0xccf   :  { %v2082_v27 = vmul.f32 1.442695, %v2081_v32 }
 0xcd1   :  { %2775 = vpow2.f32 %v2082_v27 }
 0xcdb   :  { %v2776_v36 = vpop.eup %2775 }
 0xcdc   :  { %v2084_v38 = vsel %vm1043_vm0, %v2776_v36, 0.0 }
 0xcdd   :  { %2085 = vadd.xlane.f32.xlu0 %v2084_v38 }
 0xce1   :  { %1600 = vadd.xlane.f32.xlu0 %v1599_v40 }
 0xd6a   :  { %v2086_v41 = vpop.xlane.xlu0 %2085 }
 0xd6b   :  { %2777 = vrcp.f32 %v2086_v41 }
 0xd6e   :  { %v1601_v42 = vpop.xlane.xlu0 %1600 }
 0xd6f   :  { %v1603_v44 = vmul.f32 0.015625, %v1601_v42 }
 0xd71   :  { %v1604_v45 = vsub.f32 %v1598_v39, %v1603_v44 }
 0xd73   :  { %v1605_v26 = vmul.f32 %v1604_v45, %v1604_v45 }
 0xd75   :  { %v2778_v29 = vpop.eup %2777  ;;  %v1606_v46 = vsel %vm1345_vm3, %v1605_v26, 0.0 }
 0xd76   :  { %v2088_v48 = vmul.f32 %v2778_v29, %v2776_v36  ;;  %1607 = vadd.xlane.f32.xlu1 %v1606_v46 }
 0xd78   :  { %2457 = vmatmul.mubr.msk.f32.vlgmr.msra.gmra.mrb[26].mxu1 %vm1043_vm0, %v2088_v48 }
 0xe03   :  { %v1608_v12 = vpop.xlane.xlu1 %1607 }
 0xe04   :  { %v1609_v54 = vmul.f32 0.015625, %v1608_v12 }
 0xe06   :  { %v1610_v13 = vadd.f32 1e-05, %v1609_v54 }
 0xe08   :  { %2779 = vrsqrt.f32 %v1610_v13 }
 0xe12   :  { %v2780_v51 = vpop.eup %2779 }
 0xe13   :  { %v1612_v52 = vmul.f32 %v2780_v51, %v1604_v45 }
 0xe15   :  { %v1613_v57 = vmul.f32 %v1612_v52, %v45_v55 }
 0xe17   :  { %v1614_v10 = vadd.f32 %v1613_v57, %v46_v63 }
 0xe19   :  { %v1615_v22 = vmul.f32 %v1614_v10, %v47_v11 }
 0xe1b   :  { %v1616_v23 = vsel %vm1345_vm3, %v1615_v22, 0.0 }
 0xe4b   :  { %v2158_v49 = vpop.f32.mrb[26].mxu1 }
 0xe4c   :  { %v2162_v50 = vsel %vm1345_vm3, %v2158_v49, 0.0  ;;  %v2458_v53 = vpop.f32.mrb[27].mxu1 }
 0xe4d   :  { %v2163_v58 = vrot.slane %v2162_v50, 4 }
 0xe4f   :  { %v2164_v59 = vadd.f32 %v2163_v58, %v2162_v50 }
 0xe51   :  { %v2165_v56 = vrot.slane %v2164_v59, 2 }
 0xe53   :  { %v2166_v61 = vadd.f32 %v2165_v56, %v2164_v59 }
 0xe55   :  { %v2167_v2 = vrot.slane %v2166_v61, 1 }
 0xe57   :  { %v2168_v3 = vadd.f32 %v2167_v2, %v2166_v61 }
 0xe59   :  { %v2169_v6 = vmul.f32 0.125, %v2168_v3 }
 0xe5b   :  { %v2170_v7 = vsel %vm1345_vm3, %v2169_v6, 0.0 }
 0xe5c   :  { %2171 = vadd.xlane.f32.xlu0 %v2170_v7 }
 0xee9   :  { %v2172_v62 = vpop.xlane.xlu0 %2171 }
 0xeea   :  { %v2173_v4 = vmul.f32 0.015625, %v2172_v62 }
 0xeec   :  { %v2174_v5 = vsub.f32 %v2169_v6, %v2173_v4 }
 0xeee   :  { %v2175_v16 = vmul.f32 %v2174_v5, %v2174_v5 }
 0xef0   :  { %v2176_v17 = vsel %vm1345_vm3, %v2175_v16, 0.0 }
 0xef1   :  { %2177 = vadd.xlane.f32.xlu0 %v2176_v17 }
 0xef5   :  { %1617 = vadd.xlane.f32.xlu0 %v1616_v23 }
 0xf7e   :  { %v2178_v31 = vpop.xlane.xlu0 %2177 }
 0xf7f   :  { %v2179_v34 = vmul.f32 0.015625, %v2178_v31 }
 0xf81   :  { %v2180_v47 = vadd.f32 1e-05, %v2179_v34 }
 0xf82   :  { %v1618_v60 = vpop.xlane.xlu0 %1617 }
 0xf83   :  { %2781 = vrsqrt.f32 %v2180_v47  ;;  %v1619_v0 = vadd.f32 %v1618_v60, %v48_v37 }
 0xf85   :  { %v2337_v1 = vmul.f32 -1.442695, %v1619_v0 }
 0xf87   :  { %2783 = vpow2.f32 %v2337_v1 }
 0xf8d   :  { %v2782_v8 = vpop.eup %2781 }
 0xf8e   :  { %v2182_v9 = vmul.f32 %v2782_v8, %v2174_v5 }
 0xf90   :  { %v2183_v14 = vmul.f32 %v2182_v9, %v45_v55 }
 0xf91   :  { %v2784_v15 = vpop.eup %2783 }
 0xf92   :  { %v1623_v18 = vadd.f32 1.0, %v2784_v15  ;;  %v2184_v19 = vadd.f32 %v2183_v14, %v46_v63 }
 0xf94   :  { %2785 = vrcp.f32 %v1623_v18  ;;  %v2185_v20 = vmul.f32 %v2184_v19, %v47_v11 }
 0xf96   :  { %v2186_v24 = vsel %vm1345_vm3, %v2185_v20, 0.0 }
 0xf97   :  { %2187 = vadd.xlane.f32.xlu0 %v2186_v24 }
 0xf9e   :  { %v2786_v21 = vpop.eup %2785 }
 0xf9f   :  { %1627 = vst.msk [vmem:[%s3316_s8] sm:$0x1] %vm1626_vm8, %v2786_v21 }
0x1024   :  { %v2188_v28 = vpop.xlane.xlu0 %2187 }
0x1025   :  { %v2189_v30 = vadd.f32 %v2188_v28, %v48_v37 }
0x1027   :  { %v2346_v43 = vmul.f32 -1.442695, %v2189_v30 }
0x1029   :  { %2787 = vpow2.f32 %v2346_v43 }
0x1033   :  { %v2788_v32 = vpop.eup %2787 }
0x1034   :  { %v2193_v27 = vadd.f32 1.0, %v2788_v32 }
0x1036   :  { %2789 = vrcp.f32 %v2193_v27 }
0x1040   :  { %v2790_v33 = vpop.eup %2789 }
0x1041   :  { %2196 = vst.msk [vmem:[%s3316_s8 + $0x1] sm:$0x1] %vm1626_vm8, %v2790_v33 }
0x1042   :  { %2201 = vsyncpa [#allocation3], 1 }

</bundles_post_ra>
